<compile_context>
chip_gen: v7x
topology: tpu7x:2x2x1
jax: 0.10.0
libtpu: 0.0.40
codegen_flags: <defaults>
</compile_context>

<pallas_src>
import functools
import math

import jax
import jax.numpy as jnp
from jax.experimental import pallas as pl
from jax.experimental.pallas import tpu as pltpu

# ----------------------- small synthetic BERT config -----------------------
BATCH = 2
SEQ = 8
HIDDEN = 128         # lane-dense stand-in for hidden_dim=768
NUM_HEADS = 4
HEAD_DIM = HIDDEN // NUM_HEADS
INTERMEDIATE = 512   # 4*hidden, multiple of 128
NUM_LAYERS = 2
VOCAB = 64
MAX_POS = 16
TYPE_VOCAB = 2
LN_EPS = 1e-12


# ----------------------------- in-kernel helpers ----------------------------
def _layernorm(z, g, b, eps=LN_EPS):
    mean = jnp.mean(z, axis=-1, keepdims=True)
    zc = z - mean
    var = jnp.mean(zc * zc, axis=-1, keepdims=True)
    return zc * jax.lax.rsqrt(var + eps) * g + b


def _gelu(y):
    # TODO(synk): HF BERT default hidden_act is exact (erf) GELU; using the tanh
    # approximation since erf has no guaranteed Mosaic lowering.
    c = math.sqrt(2.0 / math.pi)
    return 0.5 * y * (1.0 + jnp.tanh(c * (y + 0.044715 * y * y * y)))


# ------------------------------ fused kernel --------------------------------
def _bert_fused_kernel(
    emb_ref, bias_ref, sel_ref, embg_ref, embb_ref,
    wqkv_ref, bqkv_ref, wo_ref, bo_ref, ln1g_ref, ln1b_ref,
    wi_ref, bi_ref, wf_ref, bf_ref, ln2g_ref, ln2b_ref,
    poolw_ref, poolb_ref, clsw_ref, clsb_ref,
    out_ref, x_ref,
    *, batch, seq, num_heads, head_dim, hidden,
):
    l = pl.program_id(0)

    # Step 0: embedding LayerNorm straight into the persistent VMEM activation.
    @pl.when(l == 0)
    def _():
        x_ref[...] = _layernorm(emb_ref[...], embg_ref[...], embb_ref[...])

    x = x_ref[...]                                            # (M, D) f32

    # --- fused Q|K|V projection: one bf16 MXU pass, f32 accumulation ---------
    qkv = jnp.dot(x.astype(jnp.bfloat16), wqkv_ref[...],
                  preferred_element_type=jnp.float32) + bqkv_ref[...]   # (M, 3D)

    # --- multi-head self-attention (heads sliced in-kernel, no relayouts) ----
    scale = 1.0 / math.sqrt(head_dim)
    bias_all = bias_ref[...]                                  # (B, S) additive mask bias
    ctx_rows = []
    for b in range(batch):
        r0 = b * seq
        bias_b = bias_all[b:b + 1, :]                         # (1, S)
        heads = []
        for h in range(num_heads):
            c0 = h * head_dim
            q = qkv[r0:r0 + seq, c0:c0 + head_dim]                            # (S, Dh)
            k = qkv[r0:r0 + seq, hidden + c0:hidden + c0 + head_dim]          # (S, Dh)
            v = qkv[r0:r0 + seq, 2 * hidden + c0:2 * hidden + c0 + head_dim]  # (S, Dh)
            s = jax.lax.dot_general(q, k, (((1,), (1,)), ((), ())),
                                    preferred_element_type=jnp.float32) * scale
            s = s + bias_b
            s_max = jnp.max(s, axis=-1, keepdims=True)
            e = jnp.exp(s - s_max)
            p = e * pl.reciprocal(jnp.sum(e, axis=-1, keepdims=True), approx=True)
            heads.append(jnp.dot(p, v, preferred_element_type=jnp.float32))
        ctx_rows.append(jnp.concatenate(heads, axis=-1))      # (S, D)
    ctx = jnp.concatenate(ctx_rows, axis=0)                   # (M, D)

    # --- attention output projection + residual LayerNorm --------------------
    attn_out = jnp.dot(ctx.astype(jnp.bfloat16), wo_ref[...],
                       preferred_element_type=jnp.float32) + bo_ref[...]
    x1 = _layernorm(x + attn_out, ln1g_ref[...], ln1b_ref[...])

    # --- feed-forward block ---------------------------------------------------
    inter = jnp.dot(x1.astype(jnp.bfloat16), wi_ref[...],
                    preferred_element_type=jnp.float32) + bi_ref[...]
    inter = _gelu(inter)
    ffn = jnp.dot(inter.astype(jnp.bfloat16), wf_ref[...],
                  preferred_element_type=jnp.float32) + bf_ref[...]
    x2 = _layernorm(x1 + ffn, ln2g_ref[...], ln2b_ref[...])
    x_ref[...] = x2                                           # carry to next layer

    # --- last layer: fused pooler (tanh) + classifier -------------------------
    @pl.when(l == pl.num_programs(0) - 1)
    def _():
        cls_tok = jnp.dot(sel_ref[...], x2,
                          preferred_element_type=jnp.float32)              # (B, D) = CLS rows
        pooled = jnp.tanh(jnp.dot(cls_tok.astype(jnp.bfloat16), poolw_ref[...],
                                  preferred_element_type=jnp.float32) + poolb_ref[...])
        out_ref[...] = jnp.dot(pooled, clsw_ref[...],
                               preferred_element_type=jnp.float32) + clsb_ref[...]


# ------------------------------ parameters ---------------------------------
def init_params(key):
    keys = iter(jax.random.split(key, 12))

    def w(shape, scale=0.02):
        return jax.random.normal(next(keys), shape, jnp.float32) * scale

    L, D, F = NUM_LAYERS, HIDDEN, INTERMEDIATE
    return {
        "word_emb": w((VOCAB, D)),
        "pos_emb": w((MAX_POS, D)),
        "type_emb": w((TYPE_VOCAB, D)),
        "emb_ln_g": jnp.ones((1, D), jnp.float32),
        "emb_ln_b": jnp.zeros((1, D), jnp.float32),
        # per-layer weights stacked on a leading layer axis (bf16 for MXU),
        # biases / LN params f32
        "wqkv": w((L, D, 3 * D)).astype(jnp.bfloat16),
        "bqkv": jnp.zeros((L, 1, 3 * D), jnp.float32),
        "wo": w((L, D, D)).astype(jnp.bfloat16),
        "bo": jnp.zeros((L, 1, D), jnp.float32),
        "ln1_g": jnp.ones((L, 1, D), jnp.float32),
        "ln1_b": jnp.zeros((L, 1, D), jnp.float32),
        "wi": w((L, D, F)).astype(jnp.bfloat16),
        "bi": jnp.zeros((L, 1, F), jnp.float32),
        "wf": w((L, F, D)).astype(jnp.bfloat16),
        "bf": jnp.zeros((L, 1, D), jnp.float32),
        "ln2_g": jnp.ones((L, 1, D), jnp.float32),
        "ln2_b": jnp.zeros((L, 1, D), jnp.float32),
        "pool_w": w((D, D)).astype(jnp.bfloat16),
        "pool_b": jnp.zeros((1, D), jnp.float32),
        "cls_w": w((D, 1)),                        # torch.nn.Linear(hidden_dim, 1)
        "cls_b": jnp.zeros((1, 1), jnp.float32),
    }


# ------------------------------ forward pass --------------------------------
def bert_classifier_forward(params, input_ids, token_type_ids, attention_mask):
    b, s = input_ids.shape
    d = HIDDEN
    m = b * s

    # Embedding gathers stay in XLA (glue): word + position + token_type.
    emb = (params["word_emb"][input_ids]
           + params["pos_emb"][jnp.arange(s)][None, :, :]
           + params["type_emb"][token_type_ids]).reshape(m, d).astype(jnp.float32)

    # Extended attention mask bias: (1 - mask) * -10000, shape [B, S].
    mask_bias = (1.0 - attention_mask.astype(jnp.float32)) * -10000.0

    # Selection matrix picking the [CLS] row of each sequence (rows b*S).
    sel = jax.nn.one_hot(jnp.arange(b) * s, m, dtype=jnp.float32)          # (B, M)

    kernel = functools.partial(
        _bert_fused_kernel,
        batch=b, seq=s, num_heads=NUM_HEADS, head_dim=HEAD_DIM, hidden=d)

    logits = pl.pallas_call(
        kernel,
        grid=(NUM_LAYERS,),
        in_specs=[
            pl.BlockSpec((m, d), lambda l: (0, 0)),                       # emb
            pl.BlockSpec((b, s), lambda l: (0, 0)),                       # mask bias
            pl.BlockSpec((b, m), lambda l: (0, 0)),                       # CLS selector
            pl.BlockSpec((1, d), lambda l: (0, 0)),                       # emb LN gamma
            pl.BlockSpec((1, d), lambda l: (0, 0)),                       # emb LN beta
            pl.BlockSpec((None, d, 3 * d), lambda l: (l, 0, 0)),          # wqkv
            pl.BlockSpec((None, 1, 3 * d), lambda l: (l, 0, 0)),          # bqkv
            pl.BlockSpec((None, d, d), lambda l: (l, 0, 0)),              # wo
            pl.BlockSpec((None, 1, d), lambda l: (l, 0, 0)),              # bo
            pl.BlockSpec((None, 1, d), lambda l: (l, 0, 0)),              # ln1 gamma
            pl.BlockSpec((None, 1, d), lambda l: (l, 0, 0)),              # ln1 beta
            pl.BlockSpec((None, d, INTERMEDIATE), lambda l: (l, 0, 0)),   # wi
            pl.BlockSpec((None, 1, INTERMEDIATE), lambda l: (l, 0, 0)),   # bi
            pl.BlockSpec((None, INTERMEDIATE, d), lambda l: (l, 0, 0)),   # wf
            pl.BlockSpec((None, 1, d), lambda l: (l, 0, 0)),              # bf
            pl.BlockSpec((None, 1, d), lambda l: (l, 0, 0)),              # ln2 gamma
            pl.BlockSpec((None, 1, d), lambda l: (l, 0, 0)),              # ln2 beta
            pl.BlockSpec((d, d), lambda l: (0, 0)),                       # pool_w
            pl.BlockSpec((1, d), lambda l: (0, 0)),                       # pool_b
            pl.BlockSpec((d, 1), lambda l: (0, 0)),                       # cls_w
            pl.BlockSpec((1, 1), lambda l: (0, 0)),                       # cls_b
        ],
        out_specs=pl.BlockSpec((b, 1), lambda l: (0, 0)),
        out_shape=jax.ShapeDtypeStruct((b, 1), jnp.float32),
        scratch_shapes=[pltpu.VMEM((m, d), jnp.float32)],                 # persistent x
        compiler_params=pltpu.CompilerParams(
            dimension_semantics=("arbitrary",)),                          # layers are sequential
    )(emb, mask_bias, sel,
      params["emb_ln_g"], params["emb_ln_b"],
      params["wqkv"], params["bqkv"], params["wo"], params["bo"],
      params["ln1_g"], params["ln1_b"],
      params["wi"], params["bi"], params["wf"], params["bf"],
      params["ln2_g"], params["ln2_b"],
      params["pool_w"], params["pool_b"], params["cls_w"], params["cls_b"])

    return logits[:, 0]                                                   # [B]


# ---------------------------------- main ------------------------------------
if __name__ == "__main__":
    key = jax.random.PRNGKey(0)
    pkey, ikey = jax.random.split(key)
    params = init_params(pkey)

    input_ids = jax.random.randint(ikey, (BATCH, SEQ), 0, VOCAB, dtype=jnp.int32)
    token_type_ids = jnp.zeros((BATCH, SEQ), jnp.int32)
    attention_mask = jnp.ones((BATCH, SEQ), jnp.int32)

    out = jax.jit(bert_classifier_forward)(params, input_ids, token_type_ids, attention_mask)
    jax.block_until_ready(out)
    assert out.shape == (BATCH,) and out.dtype == jnp.float32
    print("KERNEL_OK")
</pallas_src>

<mosaic_0001>
module attributes {stable_mosaic.version = 11 : i64} {
  func.func @_bert_fused_kernel(%arg0: i32, %arg1: memref<16x128xf32, #tpu.memory_space<vmem>>, %arg2: memref<2x8xf32, #tpu.memory_space<vmem>>, %arg3: memref<2x16xf32, #tpu.memory_space<vmem>>, %arg4: memref<1x128xf32, #tpu.memory_space<vmem>>, %arg5: memref<1x128xf32, #tpu.memory_space<vmem>>, %arg6: memref<1x128x384xbf16, #tpu.memory_space<vmem>>, %arg7: memref<1x1x384xf32, #tpu.memory_space<vmem>>, %arg8: memref<1x128x128xbf16, #tpu.memory_space<vmem>>, %arg9: memref<1x1x128xf32, #tpu.memory_space<vmem>>, %arg10: memref<1x1x128xf32, #tpu.memory_space<vmem>>, %arg11: memref<1x1x128xf32, #tpu.memory_space<vmem>>, %arg12: memref<1x128x512xbf16, #tpu.memory_space<vmem>>, %arg13: memref<1x1x512xf32, #tpu.memory_space<vmem>>, %arg14: memref<1x512x128xbf16, #tpu.memory_space<vmem>>, %arg15: memref<1x1x128xf32, #tpu.memory_space<vmem>>, %arg16: memref<1x1x128xf32, #tpu.memory_space<vmem>>, %arg17: memref<1x1x128xf32, #tpu.memory_space<vmem>>, %arg18: memref<128x128xbf16, #tpu.memory_space<vmem>>, %arg19: memref<1x128xf32, #tpu.memory_space<vmem>>, %arg20: memref<128x1xf32, #tpu.memory_space<vmem>>, %arg21: memref<1x1xf32, #tpu.memory_space<vmem>>, %arg22: memref<2x1xf32, #tpu.memory_space<vmem>>, %arg23: memref<16x128xf32, #tpu.memory_space<vmem>>) attributes {dimension_semantics = [#tpu.dimension_semantics<arbitrary>], iteration_bounds = array<i64: 2>, scalar_prefetch = 0 : i64, scratch_operands = 1 : i64, tpu.core_type = #tpu.core_type<tc>, window_params = [{pipeline_mode = #tpu.pipeline_mode<synchronous>, transform_indices = @transform_0, window_bounds = array<i64: 16, 128>}, {pipeline_mode = #tpu.pipeline_mode<synchronous>, transform_indices = @transform_1, window_bounds = array<i64: 2, 8>}, {pipeline_mode = #tpu.pipeline_mode<synchronous>, transform_indices = @transform_2, window_bounds = array<i64: 2, 16>}, {pipeline_mode = #tpu.pipeline_mode<synchronous>, transform_indices = @transform_3, window_bounds = array<i64: 1, 128>}, {pipeline_mode = #tpu.pipeline_mode<synchronous>, transform_indices = @transform_4, window_bounds = array<i64: 1, 128>}, {transform_indices = @transform_5, window_bounds = array<i64: 1, 128, 384>}, {transform_indices = @transform_6, window_bounds = array<i64: 1, 1, 384>}, {transform_indices = @transform_7, window_bounds = array<i64: 1, 128, 128>}, {transform_indices = @transform_8, window_bounds = array<i64: 1, 1, 128>}, {transform_indices = @transform_9, window_bounds = array<i64: 1, 1, 128>}, {transform_indices = @transform_10, window_bounds = array<i64: 1, 1, 128>}, {transform_indices = @transform_11, window_bounds = array<i64: 1, 128, 512>}, {transform_indices = @transform_12, window_bounds = array<i64: 1, 1, 512>}, {transform_indices = @transform_13, window_bounds = array<i64: 1, 512, 128>}, {transform_indices = @transform_14, window_bounds = array<i64: 1, 1, 128>}, {transform_indices = @transform_15, window_bounds = array<i64: 1, 1, 128>}, {transform_indices = @transform_16, window_bounds = array<i64: 1, 1, 128>}, {pipeline_mode = #tpu.pipeline_mode<synchronous>, transform_indices = @transform_17, window_bounds = array<i64: 128, 128>}, {pipeline_mode = #tpu.pipeline_mode<synchronous>, transform_indices = @transform_18, window_bounds = array<i64: 1, 128>}, {pipeline_mode = #tpu.pipeline_mode<synchronous>, transform_indices = @transform_19, window_bounds = array<i64: 128, 1>}, {pipeline_mode = #tpu.pipeline_mode<synchronous>, transform_indices = @transform_20, window_bounds = array<i64: 1, 1>}, {pipeline_mode = #tpu.pipeline_mode<synchronous>, transform_indices = @transform_21, window_bounds = array<i64: 2, 1>}]} {
    %c0_i32 = arith.constant 0 : i32
    %0 = arith.cmpi eq, %arg0, %c0_i32 : i32
    %1 = arith.extui %0 : i1 to i32
    %c0_i32_0 = arith.constant 0 : i32
    %2 = arith.cmpi ne, %1, %c0_i32_0 : i32
    scf.if %2 {
      %c0_100 = arith.constant 0 : index
      %c0_101 = arith.constant 0 : index
      %261 = vector.load %arg1[%c0_100, %c0_101] : memref<16x128xf32, #tpu.memory_space<vmem>>, vector<16x128xf32>
      %c0_102 = arith.constant 0 : index
      %c0_103 = arith.constant 0 : index
      %262 = vector.load %arg4[%c0_102, %c0_103] : memref<1x128xf32, #tpu.memory_space<vmem>>, vector<1x128xf32>
      %c0_104 = arith.constant 0 : index
      %c0_105 = arith.constant 0 : index
      %263 = vector.load %arg5[%c0_104, %c0_105] : memref<1x128xf32, #tpu.memory_space<vmem>>, vector<1x128xf32>
      %cst_106 = arith.constant dense<0.000000e+00> : vector<16xf32>
      %264 = vector.multi_reduction <add>, %261, %cst_106 [1] : vector<16x128xf32> to vector<16xf32>
      %265 = vector.shape_cast %264 : vector<16xf32> to vector<16x1xf32>
      %cst_107 = arith.constant 1.280000e+02 : f32
      %266 = vector.broadcast %cst_107 : f32 to vector<16x1xf32>
      %267 = arith.divf %265, %266 : vector<16x1xf32>
      %268 = vector.broadcast %267 : vector<16x1xf32> to vector<16x128xf32>
      %269 = arith.subf %261, %268 : vector<16x128xf32>
      %270 = arith.mulf %269, %269 : vector<16x128xf32>
      %cst_108 = arith.constant dense<0.000000e+00> : vector<16xf32>
      %271 = vector.multi_reduction <add>, %270, %cst_108 [1] : vector<16x128xf32> to vector<16xf32>
      %272 = vector.shape_cast %271 : vector<16xf32> to vector<16x1xf32>
      %cst_109 = arith.constant 1.280000e+02 : f32
      %273 = vector.broadcast %cst_109 : f32 to vector<16x1xf32>
      %274 = arith.divf %272, %273 : vector<16x1xf32>
      %cst_110 = arith.constant 9.99999996E-13 : f32
      %275 = vector.broadcast %cst_110 : f32 to vector<16x1xf32>
      %276 = arith.addf %274, %275 : vector<16x1xf32>
      %277 = math.rsqrt %276 : vector<16x1xf32>
      %278 = vector.broadcast %277 : vector<16x1xf32> to vector<16x128xf32>
      %279 = arith.mulf %269, %278 : vector<16x128xf32>
      %280 = vector.broadcast %262 : vector<1x128xf32> to vector<16x128xf32>
      %281 = arith.mulf %279, %280 : vector<16x128xf32>
      %282 = vector.broadcast %263 : vector<1x128xf32> to vector<16x128xf32>
      %283 = arith.addf %281, %282 : vector<16x128xf32>
      %c0_111 = arith.constant 0 : index
      %c0_112 = arith.constant 0 : index
      %284 = vector.load %arg23[%c0_111, %c0_112] : memref<16x128xf32, #tpu.memory_space<vmem>>, vector<16x128xf32>
      tpu.vector_store %arg23[%c0_111, %c0_112], %283 {strides = array<i32>} : memref<16x128xf32, #tpu.memory_space<vmem>>, vector<16x128xf32>,
    } else {
    }
    %c0 = arith.constant 0 : index
    %c0_1 = arith.constant 0 : index
    %3 = vector.load %arg23[%c0, %c0_1] : memref<16x128xf32, #tpu.memory_space<vmem>>, vector<16x128xf32>
    %4 = arith.truncf %3 : vector<16x128xf32> to vector<16x128xbf16>
    %c0_2 = arith.constant 0 : index
    %c0_3 = arith.constant 0 : index
    %c0_4 = arith.constant 0 : index
    %5 = vector.load %arg6[%c0_2, %c0_3, %c0_4] : memref<1x128x384xbf16, #tpu.memory_space<vmem>>, vector<1x128x384xbf16>
    %6 = vector.shape_cast %5 : vector<1x128x384xbf16> to vector<128x384xbf16>
    %cst = arith.constant dense<0.000000e+00> : vector<16x384xf32>
    %7 = tpu.matmul %4, %6, %cst {dimension_numbers = #tpu.dot_dimension_numbers<[1], [0], [0], [1], [0, 0, 1, 1], [], []>} : vector<16x128xbf16>, vector<128x384xbf16>, vector<16x384xf32> -> vector<16x384xf32>
    %c0_5 = arith.constant 0 : index
    %c0_6 = arith.constant 0 : index
    %c0_7 = arith.constant 0 : index
    %8 = vector.load %arg7[%c0_5, %c0_6, %c0_7] : memref<1x1x384xf32, #tpu.memory_space<vmem>>, vector<1x1x384xf32>
    %9 = vector.shape_cast %8 : vector<1x1x384xf32> to vector<1x384xf32>
    %10 = vector.broadcast %9 : vector<1x384xf32> to vector<16x384xf32>
    %11 = arith.addf %7, %10 : vector<16x384xf32>
    %c0_8 = arith.constant 0 : index
    %c0_9 = arith.constant 0 : index
    %12 = vector.load %arg2[%c0_8, %c0_9] : memref<2x8xf32, #tpu.memory_space<vmem>>, vector<2x8xf32>
    %13 = vector.extract_strided_slice %12 {offsets = [0, 0], sizes = [1, 8], strides = [1, 1]} : vector<2x8xf32> to vector<1x8xf32>
    %14 = vector.extract_strided_slice %11 {offsets = [0, 0], sizes = [8, 32], strides = [1, 1]} : vector<16x384xf32> to vector<8x32xf32>
    %15 = vector.extract_strided_slice %11 {offsets = [0, 128], sizes = [8, 32], strides = [1, 1]} : vector<16x384xf32> to vector<8x32xf32>
    %16 = vector.extract_strided_slice %11 {offsets = [0, 256], sizes = [8, 32], strides = [1, 1]} : vector<16x384xf32> to vector<8x32xf32>
    %cst_10 = arith.constant dense<0.000000e+00> : vector<8x8xf32>
    %17 = tpu.matmul %14, %15, %cst_10 {dimension_numbers = #tpu.dot_dimension_numbers<[1], [1], [0], [0], [0, 0, 1, 0], [], []>} : vector<8x32xf32>, vector<8x32xf32>, vector<8x8xf32> -> vector<8x8xf32>
    %cst_11 = arith.constant 0.176776692 : f32
    %18 = vector.broadcast %cst_11 : f32 to vector<8x8xf32>
    %19 = arith.mulf %17, %18 : vector<8x8xf32>
    %20 = vector.broadcast %13 : vector<1x8xf32> to vector<8x8xf32>
    %21 = arith.addf %19, %20 : vector<8x8xf32>
    %cst_12 = arith.constant dense<0xFF800000> : vector<8xf32>
    %22 = vector.multi_reduction <maximumf>, %21, %cst_12 [1] : vector<8x8xf32> to vector<8xf32>
    %23 = vector.shape_cast %22 : vector<8xf32> to vector<8x1xf32>
    %24 = vector.broadcast %23 : vector<8x1xf32> to vector<8x8xf32>
    %25 = arith.subf %21, %24 : vector<8x8xf32>
    %26 = math.exp %25 : vector<8x8xf32>
    %cst_13 = arith.constant dense<0.000000e+00> : vector<8xf32>
    %27 = vector.multi_reduction <add>, %26, %cst_13 [1] : vector<8x8xf32> to vector<8xf32>
    %28 = vector.shape_cast %27 : vector<8xf32> to vector<8x1xf32>
    %29 = tpu.reciprocal %28 {approx = true} : vector<8x1xf32> -> vector<8x1xf32>
    %30 = vector.broadcast %29 : vector<8x1xf32> to vector<8x8xf32>
    %31 = arith.mulf %26, %30 : vector<8x8xf32>
    %cst_14 = arith.constant dense<0.000000e+00> : vector<8x32xf32>
    %32 = tpu.matmul %31, %16, %cst_14 {dimension_numbers = #tpu.dot_dimension_numbers<[1], [0], [0], [1], [0, 0, 1, 1], [], []>} : vector<8x8xf32>, vector<8x32xf32>, vector<8x32xf32> -> vector<8x32xf32>
    %33 = vector.extract_strided_slice %11 {offsets = [0, 32], sizes = [8, 32], strides = [1, 1]} : vector<16x384xf32> to vector<8x32xf32>
    %34 = vector.extract_strided_slice %11 {offsets = [0, 160], sizes = [8, 32], strides = [1, 1]} : vector<16x384xf32> to vector<8x32xf32>
    %35 = vector.extract_strided_slice %11 {offsets = [0, 288], sizes = [8, 32], strides = [1, 1]} : vector<16x384xf32> to vector<8x32xf32>
    %cst_15 = arith.constant dense<0.000000e+00> : vector<8x8xf32>
    %36 = tpu.matmul %33, %34, %cst_15 {dimension_numbers = #tpu.dot_dimension_numbers<[1], [1], [0], [0], [0, 0, 1, 0], [], []>} : vector<8x32xf32>, vector<8x32xf32>, vector<8x8xf32> -> vector<8x8xf32>
    %cst_16 = arith.constant 0.176776692 : f32
    %37 = vector.broadcast %cst_16 : f32 to vector<8x8xf32>
    %38 = arith.mulf %36, %37 : vector<8x8xf32>
    %39 = vector.broadcast %13 : vector<1x8xf32> to vector<8x8xf32>
    %40 = arith.addf %38, %39 : vector<8x8xf32>
    %cst_17 = arith.constant dense<0xFF800000> : vector<8xf32>
    %41 = vector.multi_reduction <maximumf>, %40, %cst_17 [1] : vector<8x8xf32> to vector<8xf32>
    %42 = vector.shape_cast %41 : vector<8xf32> to vector<8x1xf32>
    %43 = vector.broadcast %42 : vector<8x1xf32> to vector<8x8xf32>
    %44 = arith.subf %40, %43 : vector<8x8xf32>
    %45 = math.exp %44 : vector<8x8xf32>
    %cst_18 = arith.constant dense<0.000000e+00> : vector<8xf32>
    %46 = vector.multi_reduction <add>, %45, %cst_18 [1] : vector<8x8xf32> to vector<8xf32>
    %47 = vector.shape_cast %46 : vector<8xf32> to vector<8x1xf32>
    %48 = tpu.reciprocal %47 {approx = true} : vector<8x1xf32> -> vector<8x1xf32>
    %49 = vector.broadcast %48 : vector<8x1xf32> to vector<8x8xf32>
    %50 = arith.mulf %45, %49 : vector<8x8xf32>
    %cst_19 = arith.constant dense<0.000000e+00> : vector<8x32xf32>
    %51 = tpu.matmul %50, %35, %cst_19 {dimension_numbers = #tpu.dot_dimension_numbers<[1], [0], [0], [1], [0, 0, 1, 1], [], []>} : vector<8x8xf32>, vector<8x32xf32>, vector<8x32xf32> -> vector<8x32xf32>
    %52 = vector.extract_strided_slice %11 {offsets = [0, 64], sizes = [8, 32], strides = [1, 1]} : vector<16x384xf32> to vector<8x32xf32>
    %53 = vector.extract_strided_slice %11 {offsets = [0, 192], sizes = [8, 32], strides = [1, 1]} : vector<16x384xf32> to vector<8x32xf32>
    %54 = vector.extract_strided_slice %11 {offsets = [0, 320], sizes = [8, 32], strides = [1, 1]} : vector<16x384xf32> to vector<8x32xf32>
    %cst_20 = arith.constant dense<0.000000e+00> : vector<8x8xf32>
    %55 = tpu.matmul %52, %53, %cst_20 {dimension_numbers = #tpu.dot_dimension_numbers<[1], [1], [0], [0], [0, 0, 1, 0], [], []>} : vector<8x32xf32>, vector<8x32xf32>, vector<8x8xf32> -> vector<8x8xf32>
    %cst_21 = arith.constant 0.176776692 : f32
    %56 = vector.broadcast %cst_21 : f32 to vector<8x8xf32>
    %57 = arith.mulf %55, %56 : vector<8x8xf32>
    %58 = vector.broadcast %13 : vector<1x8xf32> to vector<8x8xf32>
    %59 = arith.addf %57, %58 : vector<8x8xf32>
    %cst_22 = arith.constant dense<0xFF800000> : vector<8xf32>
    %60 = vector.multi_reduction <maximumf>, %59, %cst_22 [1] : vector<8x8xf32> to vector<8xf32>
    %61 = vector.shape_cast %60 : vector<8xf32> to vector<8x1xf32>
    %62 = vector.broadcast %61 : vector<8x1xf32> to vector<8x8xf32>
    %63 = arith.subf %59, %62 : vector<8x8xf32>
    %64 = math.exp %63 : vector<8x8xf32>
    %cst_23 = arith.constant dense<0.000000e+00> : vector<8xf32>
    %65 = vector.multi_reduction <add>, %64, %cst_23 [1] : vector<8x8xf32> to vector<8xf32>
    %66 = vector.shape_cast %65 : vector<8xf32> to vector<8x1xf32>
    %67 = tpu.reciprocal %66 {approx = true} : vector<8x1xf32> -> vector<8x1xf32>
    %68 = vector.broadcast %67 : vector<8x1xf32> to vector<8x8xf32>
    %69 = arith.mulf %64, %68 : vector<8x8xf32>
    %cst_24 = arith.constant dense<0.000000e+00> : vector<8x32xf32>
    %70 = tpu.matmul %69, %54, %cst_24 {dimension_numbers = #tpu.dot_dimension_numbers<[1], [0], [0], [1], [0, 0, 1, 1], [], []>} : vector<8x8xf32>, vector<8x32xf32>, vector<8x32xf32> -> vector<8x32xf32>
    %71 = vector.extract_strided_slice %11 {offsets = [0, 96], sizes = [8, 32], strides = [1, 1]} : vector<16x384xf32> to vector<8x32xf32>
    %72 = vector.extract_strided_slice %11 {offsets = [0, 224], sizes = [8, 32], strides = [1, 1]} : vector<16x384xf32> to vector<8x32xf32>
    %73 = vector.extract_strided_slice %11 {offsets = [0, 352], sizes = [8, 32], strides = [1, 1]} : vector<16x384xf32> to vector<8x32xf32>
    %cst_25 = arith.constant dense<0.000000e+00> : vector<8x8xf32>
    %74 = tpu.matmul %71, %72, %cst_25 {dimension_numbers = #tpu.dot_dimension_numbers<[1], [1], [0], [0], [0, 0, 1, 0], [], []>} : vector<8x32xf32>, vector<8x32xf32>, vector<8x8xf32> -> vector<8x8xf32>
    %cst_26 = arith.constant 0.176776692 : f32
    %75 = vector.broadcast %cst_26 : f32 to vector<8x8xf32>
    %76 = arith.mulf %74, %75 : vector<8x8xf32>
    %77 = vector.broadcast %13 : vector<1x8xf32> to vector<8x8xf32>
    %78 = arith.addf %76, %77 : vector<8x8xf32>
    %cst_27 = arith.constant dense<0xFF800000> : vector<8xf32>
    %79 = vector.multi_reduction <maximumf>, %78, %cst_27 [1] : vector<8x8xf32> to vector<8xf32>
    %80 = vector.shape_cast %79 : vector<8xf32> to vector<8x1xf32>
    %81 = vector.broadcast %80 : vector<8x1xf32> to vector<8x8xf32>
    %82 = arith.subf %78, %81 : vector<8x8xf32>
    %83 = math.exp %82 : vector<8x8xf32>
    %cst_28 = arith.constant dense<0.000000e+00> : vector<8xf32>
    %84 = vector.multi_reduction <add>, %83, %cst_28 [1] : vector<8x8xf32> to vector<8xf32>
    %85 = vector.shape_cast %84 : vector<8xf32> to vector<8x1xf32>
    %86 = tpu.reciprocal %85 {approx = true} : vector<8x1xf32> -> vector<8x1xf32>
    %87 = vector.broadcast %86 : vector<8x1xf32> to vector<8x8xf32>
    %88 = arith.mulf %83, %87 : vector<8x8xf32>
    %cst_29 = arith.constant dense<0.000000e+00> : vector<8x32xf32>
    %89 = tpu.matmul %88, %73, %cst_29 {dimension_numbers = #tpu.dot_dimension_numbers<[1], [0], [0], [1], [0, 0, 1, 1], [], []>} : vector<8x8xf32>, vector<8x32xf32>, vector<8x32xf32> -> vector<8x32xf32>
    %90 = tpu.concatenate %32, %51, %70, %89 in 1 : vector<8x32xf32>, vector<8x32xf32>, vector<8x32xf32>, vector<8x32xf32> -> vector<8x128xf32>
    %91 = vector.extract_strided_slice %12 {offsets = [1, 0], sizes = [1, 8], strides = [1, 1]} : vector<2x8xf32> to vector<1x8xf32>
    %92 = vector.extract_strided_slice %11 {offsets = [8, 0], sizes = [8, 32], strides = [1, 1]} : vector<16x384xf32> to vector<8x32xf32>
    %93 = vector.extract_strided_slice %11 {offsets = [8, 128], sizes = [8, 32], strides = [1, 1]} : vector<16x384xf32> to vector<8x32xf32>
    %94 = vector.extract_strided_slice %11 {offsets = [8, 256], sizes = [8, 32], strides = [1, 1]} : vector<16x384xf32> to vector<8x32xf32>
    %cst_30 = arith.constant dense<0.000000e+00> : vector<8x8xf32>
    %95 = tpu.matmul %92, %93, %cst_30 {dimension_numbers = #tpu.dot_dimension_numbers<[1], [1], [0], [0], [0, 0, 1, 0], [], []>} : vector<8x32xf32>, vector<8x32xf32>, vector<8x8xf32> -> vector<8x8xf32>
    %cst_31 = arith.constant 0.176776692 : f32
    %96 = vector.broadcast %cst_31 : f32 to vector<8x8xf32>
    %97 = arith.mulf %95, %96 : vector<8x8xf32>
    %98 = vector.broadcast %91 : vector<1x8xf32> to vector<8x8xf32>
    %99 = arith.addf %97, %98 : vector<8x8xf32>
    %cst_32 = arith.constant dense<0xFF800000> : vector<8xf32>
    %100 = vector.multi_reduction <maximumf>, %99, %cst_32 [1] : vector<8x8xf32> to vector<8xf32>
    %101 = vector.shape_cast %100 : vector<8xf32> to vector<8x1xf32>
    %102 = vector.broadcast %101 : vector<8x1xf32> to vector<8x8xf32>
    %103 = arith.subf %99, %102 : vector<8x8xf32>
    %104 = math.exp %103 : vector<8x8xf32>
    %cst_33 = arith.constant dense<0.000000e+00> : vector<8xf32>
    %105 = vector.multi_reduction <add>, %104, %cst_33 [1] : vector<8x8xf32> to vector<8xf32>
    %106 = vector.shape_cast %105 : vector<8xf32> to vector<8x1xf32>
    %107 = tpu.reciprocal %106 {approx = true} : vector<8x1xf32> -> vector<8x1xf32>
    %108 = vector.broadcast %107 : vector<8x1xf32> to vector<8x8xf32>
    %109 = arith.mulf %104, %108 : vector<8x8xf32>
    %cst_34 = arith.constant dense<0.000000e+00> : vector<8x32xf32>
    %110 = tpu.matmul %109, %94, %cst_34 {dimension_numbers = #tpu.dot_dimension_numbers<[1], [0], [0], [1], [0, 0, 1, 1], [], []>} : vector<8x8xf32>, vector<8x32xf32>, vector<8x32xf32> -> vector<8x32xf32>
    %111 = vector.extract_strided_slice %11 {offsets = [8, 32], sizes = [8, 32], strides = [1, 1]} : vector<16x384xf32> to vector<8x32xf32>
    %112 = vector.extract_strided_slice %11 {offsets = [8, 160], sizes = [8, 32], strides = [1, 1]} : vector<16x384xf32> to vector<8x32xf32>
    %113 = vector.extract_strided_slice %11 {offsets = [8, 288], sizes = [8, 32], strides = [1, 1]} : vector<16x384xf32> to vector<8x32xf32>
    %cst_35 = arith.constant dense<0.000000e+00> : vector<8x8xf32>
    %114 = tpu.matmul %111, %112, %cst_35 {dimension_numbers = #tpu.dot_dimension_numbers<[1], [1], [0], [0], [0, 0, 1, 0], [], []>} : vector<8x32xf32>, vector<8x32xf32>, vector<8x8xf32> -> vector<8x8xf32>
    %cst_36 = arith.constant 0.176776692 : f32
    %115 = vector.broadcast %cst_36 : f32 to vector<8x8xf32>
    %116 = arith.mulf %114, %115 : vector<8x8xf32>
    %117 = vector.broadcast %91 : vector<1x8xf32> to vector<8x8xf32>
    %118 = arith.addf %116, %117 : vector<8x8xf32>
    %cst_37 = arith.constant dense<0xFF800000> : vector<8xf32>
    %119 = vector.multi_reduction <maximumf>, %118, %cst_37 [1] : vector<8x8xf32> to vector<8xf32>
    %120 = vector.shape_cast %119 : vector<8xf32> to vector<8x1xf32>
    %121 = vector.broadcast %120 : vector<8x1xf32> to vector<8x8xf32>
    %122 = arith.subf %118, %121 : vector<8x8xf32>
    %123 = math.exp %122 : vector<8x8xf32>
    %cst_38 = arith.constant dense<0.000000e+00> : vector<8xf32>
    %124 = vector.multi_reduction <add>, %123, %cst_38 [1] : vector<8x8xf32> to vector<8xf32>
    %125 = vector.shape_cast %124 : vector<8xf32> to vector<8x1xf32>
    %126 = tpu.reciprocal %125 {approx = true} : vector<8x1xf32> -> vector<8x1xf32>
    %127 = vector.broadcast %126 : vector<8x1xf32> to vector<8x8xf32>
    %128 = arith.mulf %123, %127 : vector<8x8xf32>
    %cst_39 = arith.constant dense<0.000000e+00> : vector<8x32xf32>
    %129 = tpu.matmul %128, %113, %cst_39 {dimension_numbers = #tpu.dot_dimension_numbers<[1], [0], [0], [1], [0, 0, 1, 1], [], []>} : vector<8x8xf32>, vector<8x32xf32>, vector<8x32xf32> -> vector<8x32xf32>
    %130 = vector.extract_strided_slice %11 {offsets = [8, 64], sizes = [8, 32], strides = [1, 1]} : vector<16x384xf32> to vector<8x32xf32>
    %131 = vector.extract_strided_slice %11 {offsets = [8, 192], sizes = [8, 32], strides = [1, 1]} : vector<16x384xf32> to vector<8x32xf32>
    %132 = vector.extract_strided_slice %11 {offsets = [8, 320], sizes = [8, 32], strides = [1, 1]} : vector<16x384xf32> to vector<8x32xf32>
    %cst_40 = arith.constant dense<0.000000e+00> : vector<8x8xf32>
    %133 = tpu.matmul %130, %131, %cst_40 {dimension_numbers = #tpu.dot_dimension_numbers<[1], [1], [0], [0], [0, 0, 1, 0], [], []>} : vector<8x32xf32>, vector<8x32xf32>, vector<8x8xf32> -> vector<8x8xf32>
    %cst_41 = arith.constant 0.176776692 : f32
    %134 = vector.broadcast %cst_41 : f32 to vector<8x8xf32>
    %135 = arith.mulf %133, %134 : vector<8x8xf32>
    %136 = vector.broadcast %91 : vector<1x8xf32> to vector<8x8xf32>
    %137 = arith.addf %135, %136 : vector<8x8xf32>
    %cst_42 = arith.constant dense<0xFF800000> : vector<8xf32>
    %138 = vector.multi_reduction <maximumf>, %137, %cst_42 [1] : vector<8x8xf32> to vector<8xf32>
    %139 = vector.shape_cast %138 : vector<8xf32> to vector<8x1xf32>
    %140 = vector.broadcast %139 : vector<8x1xf32> to vector<8x8xf32>
    %141 = arith.subf %137, %140 : vector<8x8xf32>
    %142 = math.exp %141 : vector<8x8xf32>
    %cst_43 = arith.constant dense<0.000000e+00> : vector<8xf32>
    %143 = vector.multi_reduction <add>, %142, %cst_43 [1] : vector<8x8xf32> to vector<8xf32>
    %144 = vector.shape_cast %143 : vector<8xf32> to vector<8x1xf32>
    %145 = tpu.reciprocal %144 {approx = true} : vector<8x1xf32> -> vector<8x1xf32>
    %146 = vector.broadcast %145 : vector<8x1xf32> to vector<8x8xf32>
    %147 = arith.mulf %142, %146 : vector<8x8xf32>
    %cst_44 = arith.constant dense<0.000000e+00> : vector<8x32xf32>
    %148 = tpu.matmul %147, %132, %cst_44 {dimension_numbers = #tpu.dot_dimension_numbers<[1], [0], [0], [1], [0, 0, 1, 1], [], []>} : vector<8x8xf32>, vector<8x32xf32>, vector<8x32xf32> -> vector<8x32xf32>
    %149 = vector.extract_strided_slice %11 {offsets = [8, 96], sizes = [8, 32], strides = [1, 1]} : vector<16x384xf32> to vector<8x32xf32>
    %150 = vector.extract_strided_slice %11 {offsets = [8, 224], sizes = [8, 32], strides = [1, 1]} : vector<16x384xf32> to vector<8x32xf32>
    %151 = vector.extract_strided_slice %11 {offsets = [8, 352], sizes = [8, 32], strides = [1, 1]} : vector<16x384xf32> to vector<8x32xf32>
    %cst_45 = arith.constant dense<0.000000e+00> : vector<8x8xf32>
    %152 = tpu.matmul %149, %150, %cst_45 {dimension_numbers = #tpu.dot_dimension_numbers<[1], [1], [0], [0], [0, 0, 1, 0], [], []>} : vector<8x32xf32>, vector<8x32xf32>, vector<8x8xf32> -> vector<8x8xf32>
    %cst_46 = arith.constant 0.176776692 : f32
    %153 = vector.broadcast %cst_46 : f32 to vector<8x8xf32>
    %154 = arith.mulf %152, %153 : vector<8x8xf32>
    %155 = vector.broadcast %91 : vector<1x8xf32> to vector<8x8xf32>
    %156 = arith.addf %154, %155 : vector<8x8xf32>
    %cst_47 = arith.constant dense<0xFF800000> : vector<8xf32>
    %157 = vector.multi_reduction <maximumf>, %156, %cst_47 [1] : vector<8x8xf32> to vector<8xf32>
    %158 = vector.shape_cast %157 : vector<8xf32> to vector<8x1xf32>
    %159 = vector.broadcast %158 : vector<8x1xf32> to vector<8x8xf32>
    %160 = arith.subf %156, %159 : vector<8x8xf32>
    %161 = math.exp %160 : vector<8x8xf32>
    %cst_48 = arith.constant dense<0.000000e+00> : vector<8xf32>
    %162 = vector.multi_reduction <add>, %161, %cst_48 [1] : vector<8x8xf32> to vector<8xf32>
    %163 = vector.shape_cast %162 : vector<8xf32> to vector<8x1xf32>
    %164 = tpu.reciprocal %163 {approx = true} : vector<8x1xf32> -> vector<8x1xf32>
    %165 = vector.broadcast %164 : vector<8x1xf32> to vector<8x8xf32>
    %166 = arith.mulf %161, %165 : vector<8x8xf32>
    %cst_49 = arith.constant dense<0.000000e+00> : vector<8x32xf32>
    %167 = tpu.matmul %166, %151, %cst_49 {dimension_numbers = #tpu.dot_dimension_numbers<[1], [0], [0], [1], [0, 0, 1, 1], [], []>} : vector<8x8xf32>, vector<8x32xf32>, vector<8x32xf32> -> vector<8x32xf32>
    %168 = tpu.concatenate %110, %129, %148, %167 in 1 : vector<8x32xf32>, vector<8x32xf32>, vector<8x32xf32>, vector<8x32xf32> -> vector<8x128xf32>
    %169 = tpu.concatenate %90, %168 in 0 : vector<8x128xf32>, vector<8x128xf32> -> vector<16x128xf32>
    %170 = arith.truncf %169 : vector<16x128xf32> to vector<16x128xbf16>
    %c0_50 = arith.constant 0 : index
    %c0_51 = arith.constant 0 : index
    %c0_52 = arith.constant 0 : index
    %171 = vector.load %arg8[%c0_50, %c0_51, %c0_52] : memref<1x128x128xbf16, #tpu.memory_space<vmem>>, vector<1x128x128xbf16>
    %172 = vector.shape_cast %171 : vector<1x128x128xbf16> to vector<128x128xbf16>
    %cst_53 = arith.constant dense<0.000000e+00> : vector<16x128xf32>
    %173 = tpu.matmul %170, %172, %cst_53 {dimension_numbers = #tpu.dot_dimension_numbers<[1], [0], [0], [1], [0, 0, 1, 1], [], []>} : vector<16x128xbf16>, vector<128x128xbf16>, vector<16x128xf32> -> vector<16x128xf32>
    %c0_54 = arith.constant 0 : index
    %c0_55 = arith.constant 0 : index
    %c0_56 = arith.constant 0 : index
    %174 = vector.load %arg9[%c0_54, %c0_55, %c0_56] : memref<1x1x128xf32, #tpu.memory_space<vmem>>, vector<1x1x128xf32>
    %175 = vector.shape_cast %174 : vector<1x1x128xf32> to vector<1x128xf32>
    %176 = vector.broadcast %175 : vector<1x128xf32> to vector<16x128xf32>
    %177 = arith.addf %173, %176 : vector<16x128xf32>
    %178 = arith.addf %3, %177 : vector<16x128xf32>
    %c0_57 = arith.constant 0 : index
    %c0_58 = arith.constant 0 : index
    %c0_59 = arith.constant 0 : index
    %179 = vector.load %arg10[%c0_57, %c0_58, %c0_59] : memref<1x1x128xf32, #tpu.memory_space<vmem>>, vector<1x1x128xf32>
    %180 = vector.shape_cast %179 : vector<1x1x128xf32> to vector<1x128xf32>
    %c0_60 = arith.constant 0 : index
    %c0_61 = arith.constant 0 : index
    %c0_62 = arith.constant 0 : index
    %181 = vector.load %arg11[%c0_60, %c0_61, %c0_62] : memref<1x1x128xf32, #tpu.memory_space<vmem>>, vector<1x1x128xf32>
    %182 = vector.shape_cast %181 : vector<1x1x128xf32> to vector<1x128xf32>
    %cst_63 = arith.constant dense<0.000000e+00> : vector<16xf32>
    %183 = vector.multi_reduction <add>, %178, %cst_63 [1] : vector<16x128xf32> to vector<16xf32>
    %184 = vector.shape_cast %183 : vector<16xf32> to vector<16x1xf32>
    %cst_64 = arith.constant 1.280000e+02 : f32
    %185 = vector.broadcast %cst_64 : f32 to vector<16x1xf32>
    %186 = arith.divf %184, %185 : vector<16x1xf32>
    %187 = vector.broadcast %186 : vector<16x1xf32> to vector<16x128xf32>
    %188 = arith.subf %178, %187 : vector<16x128xf32>
    %189 = arith.mulf %188, %188 : vector<16x128xf32>
    %cst_65 = arith.constant dense<0.000000e+00> : vector<16xf32>
    %190 = vector.multi_reduction <add>, %189, %cst_65 [1] : vector<16x128xf32> to vector<16xf32>
    %191 = vector.shape_cast %190 : vector<16xf32> to vector<16x1xf32>
    %cst_66 = arith.constant 1.280000e+02 : f32
    %192 = vector.broadcast %cst_66 : f32 to vector<16x1xf32>
    %193 = arith.divf %191, %192 : vector<16x1xf32>
    %cst_67 = arith.constant 9.99999996E-13 : f32
    %194 = vector.broadcast %cst_67 : f32 to vector<16x1xf32>
    %195 = arith.addf %193, %194 : vector<16x1xf32>
    %196 = math.rsqrt %195 : vector<16x1xf32>
    %197 = vector.broadcast %196 : vector<16x1xf32> to vector<16x128xf32>
    %198 = arith.mulf %188, %197 : vector<16x128xf32>
    %199 = vector.broadcast %180 : vector<1x128xf32> to vector<16x128xf32>
    %200 = arith.mulf %198, %199 : vector<16x128xf32>
    %201 = vector.broadcast %182 : vector<1x128xf32> to vector<16x128xf32>
    %202 = arith.addf %200, %201 : vector<16x128xf32>
    %203 = arith.truncf %202 : vector<16x128xf32> to vector<16x128xbf16>
    %c0_68 = arith.constant 0 : index
    %c0_69 = arith.constant 0 : index
    %c0_70 = arith.constant 0 : index
    %204 = vector.load %arg12[%c0_68, %c0_69, %c0_70] : memref<1x128x512xbf16, #tpu.memory_space<vmem>>, vector<1x128x512xbf16>
    %205 = vector.shape_cast %204 : vector<1x128x512xbf16> to vector<128x512xbf16>
    %cst_71 = arith.constant dense<0.000000e+00> : vector<16x512xf32>
    %206 = tpu.matmul %203, %205, %cst_71 {dimension_numbers = #tpu.dot_dimension_numbers<[1], [0], [0], [1], [0, 0, 1, 1], [], []>} : vector<16x128xbf16>, vector<128x512xbf16>, vector<16x512xf32> -> vector<16x512xf32>
    %c0_72 = arith.constant 0 : index
    %c0_73 = arith.constant 0 : index
    %c0_74 = arith.constant 0 : index
    %207 = vector.load %arg13[%c0_72, %c0_73, %c0_74] : memref<1x1x512xf32, #tpu.memory_space<vmem>>, vector<1x1x512xf32>
    %208 = vector.shape_cast %207 : vector<1x1x512xf32> to vector<1x512xf32>
    %209 = vector.broadcast %208 : vector<1x512xf32> to vector<16x512xf32>
    %210 = arith.addf %206, %209 : vector<16x512xf32>
    %cst_75 = arith.constant 5.000000e-01 : f32
    %211 = vector.broadcast %cst_75 : f32 to vector<16x512xf32>
    %212 = arith.mulf %211, %210 : vector<16x512xf32>
    %cst_76 = arith.constant 4.471500e-02 : f32
    %213 = vector.broadcast %cst_76 : f32 to vector<16x512xf32>
    %214 = arith.mulf %213, %210 : vector<16x512xf32>
    %215 = arith.mulf %214, %210 : vector<16x512xf32>
    %216 = arith.mulf %215, %210 : vector<16x512xf32>
    %217 = arith.addf %210, %216 : vector<16x512xf32>
    %cst_77 = arith.constant 0.797884583 : f32
    %218 = vector.broadcast %cst_77 : f32 to vector<16x512xf32>
    %219 = arith.mulf %218, %217 : vector<16x512xf32>
    %220 = math.tanh %219 : vector<16x512xf32>
    %cst_78 = arith.constant 1.000000e+00 : f32
    %221 = vector.broadcast %cst_78 : f32 to vector<16x512xf32>
    %222 = arith.addf %221, %220 : vector<16x512xf32>
    %223 = arith.mulf %212, %222 : vector<16x512xf32>
    %224 = arith.truncf %223 : vector<16x512xf32> to vector<16x512xbf16>
    %c0_79 = arith.constant 0 : index
    %c0_80 = arith.constant 0 : index
    %c0_81 = arith.constant 0 : index
    %225 = vector.load %arg14[%c0_79, %c0_80, %c0_81] : memref<1x512x128xbf16, #tpu.memory_space<vmem>>, vector<1x512x128xbf16>
    %226 = vector.shape_cast %225 : vector<1x512x128xbf16> to vector<512x128xbf16>
    %cst_82 = arith.constant dense<0.000000e+00> : vector<16x128xf32>
    %227 = tpu.matmul %224, %226, %cst_82 {dimension_numbers = #tpu.dot_dimension_numbers<[1], [0], [0], [1], [0, 0, 1, 1], [], []>} : vector<16x512xbf16>, vector<512x128xbf16>, vector<16x128xf32> -> vector<16x128xf32>
    %c0_83 = arith.constant 0 : index
    %c0_84 = arith.constant 0 : index
    %c0_85 = arith.constant 0 : index
    %228 = vector.load %arg15[%c0_83, %c0_84, %c0_85] : memref<1x1x128xf32, #tpu.memory_space<vmem>>, vector<1x1x128xf32>
    %229 = vector.shape_cast %228 : vector<1x1x128xf32> to vector<1x128xf32>
    %230 = vector.broadcast %229 : vector<1x128xf32> to vector<16x128xf32>
    %231 = arith.addf %227, %230 : vector<16x128xf32>
    %232 = arith.addf %202, %231 : vector<16x128xf32>
    %c0_86 = arith.constant 0 : index
    %c0_87 = arith.constant 0 : index
    %c0_88 = arith.constant 0 : index
    %233 = vector.load %arg16[%c0_86, %c0_87, %c0_88] : memref<1x1x128xf32, #tpu.memory_space<vmem>>, vector<1x1x128xf32>
    %234 = vector.shape_cast %233 : vector<1x1x128xf32> to vector<1x128xf32>
    %c0_89 = arith.constant 0 : index
    %c0_90 = arith.constant 0 : index
    %c0_91 = arith.constant 0 : index
    %235 = vector.load %arg17[%c0_89, %c0_90, %c0_91] : memref<1x1x128xf32, #tpu.memory_space<vmem>>, vector<1x1x128xf32>
    %236 = vector.shape_cast %235 : vector<1x1x128xf32> to vector<1x128xf32>
    %cst_92 = arith.constant dense<0.000000e+00> : vector<16xf32>
    %237 = vector.multi_reduction <add>, %232, %cst_92 [1] : vector<16x128xf32> to vector<16xf32>
    %238 = vector.shape_cast %237 : vector<16xf32> to vector<16x1xf32>
    %cst_93 = arith.constant 1.280000e+02 : f32
    %239 = vector.broadcast %cst_93 : f32 to vector<16x1xf32>
    %240 = arith.divf %238, %239 : vector<16x1xf32>
    %241 = vector.broadcast %240 : vector<16x1xf32> to vector<16x128xf32>
    %242 = arith.subf %232, %241 : vector<16x128xf32>
    %243 = arith.mulf %242, %242 : vector<16x128xf32>
    %cst_94 = arith.constant dense<0.000000e+00> : vector<16xf32>
    %244 = vector.multi_reduction <add>, %243, %cst_94 [1] : vector<16x128xf32> to vector<16xf32>
    %245 = vector.shape_cast %244 : vector<16xf32> to vector<16x1xf32>
    %cst_95 = arith.constant 1.280000e+02 : f32
    %246 = vector.broadcast %cst_95 : f32 to vector<16x1xf32>
    %247 = arith.divf %245, %246 : vector<16x1xf32>
    %cst_96 = arith.constant 9.99999996E-13 : f32
    %248 = vector.broadcast %cst_96 : f32 to vector<16x1xf32>
    %249 = arith.addf %247, %248 : vector<16x1xf32>
    %250 = math.rsqrt %249 : vector<16x1xf32>
    %251 = vector.broadcast %250 : vector<16x1xf32> to vector<16x128xf32>
    %252 = arith.mulf %242, %251 : vector<16x128xf32>
    %253 = vector.broadcast %234 : vector<1x128xf32> to vector<16x128xf32>
    %254 = arith.mulf %252, %253 : vector<16x128xf32>
    %255 = vector.broadcast %236 : vector<1x128xf32> to vector<16x128xf32>
    %256 = arith.addf %254, %255 : vector<16x128xf32>
    %c0_97 = arith.constant 0 : index
    %c0_98 = arith.constant 0 : index
    %257 = vector.load %arg23[%c0_97, %c0_98] : memref<16x128xf32, #tpu.memory_space<vmem>>, vector<16x128xf32>
    tpu.vector_store %arg23[%c0_97, %c0_98], %256 {strides = array<i32>} : memref<16x128xf32, #tpu.memory_space<vmem>>, vector<16x128xf32>,
    %c1_i32 = arith.constant 1 : i32
    %258 = arith.cmpi eq, %arg0, %c1_i32 : i32
    %259 = arith.extui %258 : i1 to i32
    %c0_i32_99 = arith.constant 0 : i32
    %260 = arith.cmpi ne, %259, %c0_i32_99 : i32
    scf.if %260 {
      %c0_100 = arith.constant 0 : index
      %c0_101 = arith.constant 0 : index
      %261 = vector.load %arg3[%c0_100, %c0_101] : memref<2x16xf32, #tpu.memory_space<vmem>>, vector<2x16xf32>
      %cst_102 = arith.constant dense<0.000000e+00> : vector<2x128xf32>
      %262 = tpu.matmul %261, %256, %cst_102 {dimension_numbers = #tpu.dot_dimension_numbers<[1], [0], [0], [1], [0, 0, 1, 1], [], []>} : vector<2x16xf32>, vector<16x128xf32>, vector<2x128xf32> -> vector<2x128xf32>
      %263 = arith.truncf %262 : vector<2x128xf32> to vector<2x128xbf16>
      %c0_103 = arith.constant 0 : index
      %c0_104 = arith.constant 0 : index
      %264 = vector.load %arg18[%c0_103, %c0_104] : memref<128x128xbf16, #tpu.memory_space<vmem>>, vector<128x128xbf16>
      %cst_105 = arith.constant dense<0.000000e+00> : vector<2x128xf32>
      %265 = tpu.matmul %263, %264, %cst_105 {dimension_numbers = #tpu.dot_dimension_numbers<[1], [0], [0], [1], [0, 0, 1, 1], [], []>} : vector<2x128xbf16>, vector<128x128xbf16>, vector<2x128xf32> -> vector<2x128xf32>
      %c0_106 = arith.constant 0 : index
      %c0_107 = arith.constant 0 : index
      %266 = vector.load %arg19[%c0_106, %c0_107] : memref<1x128xf32, #tpu.memory_space<vmem>>, vector<1x128xf32>
      %267 = vector.broadcast %266 : vector<1x128xf32> to vector<2x128xf32>
      %268 = arith.addf %265, %267 : vector<2x128xf32>
      %269 = math.tanh %268 : vector<2x128xf32>
      %c0_108 = arith.constant 0 : index
      %c0_109 = arith.constant 0 : index
      %270 = vector.load %arg20[%c0_108, %c0_109] : memref<128x1xf32, #tpu.memory_space<vmem>>, vector<128x1xf32>
      %cst_110 = arith.constant dense<0.000000e+00> : vector<2x1xf32>
      %271 = tpu.matmul %269, %270, %cst_110 {dimension_numbers = #tpu.dot_dimension_numbers<[1], [0], [0], [1], [0, 0, 1, 1], [], []>} : vector<2x128xf32>, vector<128x1xf32>, vector<2x1xf32> -> vector<2x1xf32>
      %c0_111 = arith.constant 0 : index
      %c0_112 = arith.constant 0 : index
      %272 = vector.load %arg21[%c0_111, %c0_112] : memref<1x1xf32, #tpu.memory_space<vmem>>, vector<1x1xf32>
      %273 = vector.broadcast %272 : vector<1x1xf32> to vector<2x1xf32>
      %274 = arith.addf %271, %273 : vector<2x1xf32>
      %c0_113 = arith.constant 0 : index
      %c0_114 = arith.constant 0 : index
      %275 = vector.load %arg22[%c0_113, %c0_114] : memref<2x1xf32, #tpu.memory_space<vmem>>, vector<2x1xf32>
      tpu.vector_store %arg22[%c0_113, %c0_114], %274 {strides = array<i32>} : memref<2x1xf32, #tpu.memory_space<vmem>>, vector<2x1xf32>,
    } else {
    }
    return
  }
  func.func @transform_0(%arg0: i32) -> (i32, i32) {
    %c0_i32 = arith.constant 0 : i32
    %c0_i32_0 = arith.constant 0 : i32
    %c0_i32_1 = arith.constant 0 : i32
    return %c0_i32, %c0_i32_0 : i32, i32
  }
  func.func @transform_1(%arg0: i32) -> (i32, i32) {
    %c0_i32 = arith.constant 0 : i32
    %c0_i32_0 = arith.constant 0 : i32
    %c0_i32_1 = arith.constant 0 : i32
    return %c0_i32, %c0_i32_0 : i32, i32
  }
  func.func @transform_2(%arg0: i32) -> (i32, i32) {
    %c0_i32 = arith.constant 0 : i32
    %c0_i32_0 = arith.constant 0 : i32
    %c0_i32_1 = arith.constant 0 : i32
    return %c0_i32, %c0_i32_0 : i32, i32
  }
  func.func @transform_3(%arg0: i32) -> (i32, i32) {
    %c0_i32 = arith.constant 0 : i32
    %c0_i32_0 = arith.constant 0 : i32
    %c0_i32_1 = arith.constant 0 : i32
    return %c0_i32, %c0_i32_0 : i32, i32
  }
  func.func @transform_4(%arg0: i32) -> (i32, i32) {
    %c0_i32 = arith.constant 0 : i32
    %c0_i32_0 = arith.constant 0 : i32
    %c0_i32_1 = arith.constant 0 : i32
    return %c0_i32, %c0_i32_0 : i32, i32
  }
  func.func @transform_5(%arg0: i32) -> (i32, i32, i32) {
    %c0_i32 = arith.constant 0 : i32
    %c0_i32_0 = arith.constant 0 : i32
    %c0_i32_1 = arith.constant 0 : i32
    return %arg0, %c0_i32, %c0_i32_0 : i32, i32, i32
  }
  func.func @transform_6(%arg0: i32) -> (i32, i32, i32) {
    %c0_i32 = arith.constant 0 : i32
    %c0_i32_0 = arith.constant 0 : i32
    %c0_i32_1 = arith.constant 0 : i32
    return %arg0, %c0_i32, %c0_i32_0 : i32, i32, i32
  }
  func.func @transform_7(%arg0: i32) -> (i32, i32, i32) {
    %c0_i32 = arith.constant 0 : i32
    %c0_i32_0 = arith.constant 0 : i32
    %c0_i32_1 = arith.constant 0 : i32
    return %arg0, %c0_i32, %c0_i32_0 : i32, i32, i32
  }
  func.func @transform_8(%arg0: i32) -> (i32, i32, i32) {
    %c0_i32 = arith.constant 0 : i32
    %c0_i32_0 = arith.constant 0 : i32
    %c0_i32_1 = arith.constant 0 : i32
    return %arg0, %c0_i32, %c0_i32_0 : i32, i32, i32
  }
  func.func @transform_9(%arg0: i32) -> (i32, i32, i32) {
    %c0_i32 = arith.constant 0 : i32
    %c0_i32_0 = arith.constant 0 : i32
    %c0_i32_1 = arith.constant 0 : i32
    return %arg0, %c0_i32, %c0_i32_0 : i32, i32, i32
  }
  func.func @transform_10(%arg0: i32) -> (i32, i32, i32) {
    %c0_i32 = arith.constant 0 : i32
    %c0_i32_0 = arith.constant 0 : i32
    %c0_i32_1 = arith.constant 0 : i32
    return %arg0, %c0_i32, %c0_i32_0 : i32, i32, i32
  }
  func.func @transform_11(%arg0: i32) -> (i32, i32, i32) {
    %c0_i32 = arith.constant 0 : i32
    %c0_i32_0 = arith.constant 0 : i32
    %c0_i32_1 = arith.constant 0 : i32
    return %arg0, %c0_i32, %c0_i32_0 : i32, i32, i32
  }
  func.func @transform_12(%arg0: i32) -> (i32, i32, i32) {
    %c0_i32 = arith.constant 0 : i32
    %c0_i32_0 = arith.constant 0 : i32
    %c0_i32_1 = arith.constant 0 : i32
    return %arg0, %c0_i32, %c0_i32_0 : i32, i32, i32
  }
  func.func @transform_13(%arg0: i32) -> (i32, i32, i32) {
    %c0_i32 = arith.constant 0 : i32
    %c0_i32_0 = arith.constant 0 : i32
    %c0_i32_1 = arith.constant 0 : i32
    return %arg0, %c0_i32, %c0_i32_0 : i32, i32, i32
  }
  func.func @transform_14(%arg0: i32) -> (i32, i32, i32) {
    %c0_i32 = arith.constant 0 : i32
    %c0_i32_0 = arith.constant 0 : i32
    %c0_i32_1 = arith.constant 0 : i32
    return %arg0, %c0_i32, %c0_i32_0 : i32, i32, i32
  }
  func.func @transform_15(%arg0: i32) -> (i32, i32, i32) {
    %c0_i32 = arith.constant 0 : i32
    %c0_i32_0 = arith.constant 0 : i32
    %c0_i32_1 = arith.constant 0 : i32
    return %arg0, %c0_i32, %c0_i32_0 : i32, i32, i32
  }
  func.func @transform_16(%arg0: i32) -> (i32, i32, i32) {
    %c0_i32 = arith.constant 0 : i32
    %c0_i32_0 = arith.constant 0 : i32
    %c0_i32_1 = arith.constant 0 : i32
    return %arg0, %c0_i32, %c0_i32_0 : i32, i32, i32
  }
  func.func @transform_17(%arg0: i32) -> (i32, i32) {
    %c0_i32 = arith.constant 0 : i32
    %c0_i32_0 = arith.constant 0 : i32
    %c0_i32_1 = arith.constant 0 : i32
    return %c0_i32, %c0_i32_0 : i32, i32
  }
  func.func @transform_18(%arg0: i32) -> (i32, i32) {
    %c0_i32 = arith.constant 0 : i32
    %c0_i32_0 = arith.constant 0 : i32
    %c0_i32_1 = arith.constant 0 : i32
    return %c0_i32, %c0_i32_0 : i32, i32
  }
  func.func @transform_19(%arg0: i32) -> (i32, i32) {
    %c0_i32 = arith.constant 0 : i32
    %c0_i32_0 = arith.constant 0 : i32
    %c0_i32_1 = arith.constant 0 : i32
    return %c0_i32, %c0_i32_0 : i32, i32
  }
  func.func @transform_20(%arg0: i32) -> (i32, i32) {
    %c0_i32 = arith.constant 0 : i32
    %c0_i32_0 = arith.constant 0 : i32
    %c0_i32_1 = arith.constant 0 : i32
    return %c0_i32, %c0_i32_0 : i32, i32
  }
  func.func @transform_21(%arg0: i32) -> (i32, i32) {
    %c0_i32 = arith.constant 0 : i32
    %c0_i32_0 = arith.constant 0 : i32
    %c0_i32_1 = arith.constant 0 : i32
    return %c0_i32, %c0_i32_0 : i32, i32
  }
}

</mosaic_0001>

<bundles_post_ra>
// kernel: bert_classifier_forward.1
= control target key start
LH: loop header
LB: loop body
LE: loop exit
PB: predicated region body
PF: predicated region fallthrough
CT: control target
= control target key end

     0   :  { %s5640_s0 = inlined_call_operand.vmem [shape: f32[16,128], index: 0, kind: input, shape index: {}]   ;;  %s5641_s1 = inlined_call_operand.vmem [shape: f32[2,8], index: 1, kind: input, shape index: {}]   ;;  %s5642_s2 = inlined_call_operand.vmem [shape: f32[2,16], index: 2, kind: input, shape index: {}]   ;;  %s5643_s3 = inlined_call_operand.vmem [shape: f32[1,128], index: 3, kind: input, shape index: {}]   ;;  %s5644_s4 = inlined_call_operand.vmem [shape: f32[1,128], index: 4, kind: input, shape index: {}]   ;;  %s5645_s5 = inlined_call_operand.vmem [shape: bf16[2,128,384], index: 5, kind: input, shape index: {}]   ;;  %s5646_s6 = inlined_call_operand.vmem [shape: f32[2,1,384], index: 6, kind: input, shape index: {}]   ;;  %s5647_s7 = inlined_call_operand.vmem [shape: bf16[2,128,128], index: 7, kind: input, shape index: {}]   ;;  %s5648_s8 = inlined_call_operand.vmem [shape: f32[2,1,128], index: 8, kind: input, shape index: {}]   ;;  %s5649_s9 = inlined_call_operand.vmem [shape: f32[2,1,128], index: 9, kind: input, shape index: {}]   ;;  %s5650_s10 = inlined_call_operand.vmem [shape: f32[2,1,128], index: 10, kind: input, shape index: {}]   ;;  %s5651_s11 = inlined_call_operand.hbm [shape: bf16[2,128,512], index: 11, kind: input, shape index: {}]   ;;  %s5652_s12 = inlined_call_operand.vmem [shape: f32[2,1,512], index: 12, kind: input, shape index: {}]   ;;  %s5653_s13 = inlined_call_operand.hbm [shape: bf16[2,512,128], index: 13, kind: input, shape index: {}]   ;;  %s5654_s14 = inlined_call_operand.vmem [shape: f32[2,1,128], index: 14, kind: input, shape index: {}]   ;;  %s5655_s15 = inlined_call_operand.vmem [shape: f32[2,1,128], index: 15, kind: input, shape index: {}]   ;;  %s5656_s16 = inlined_call_operand.vmem [shape: f32[2,1,128], index: 16, kind: input, shape index: {}]   ;;  %s5657_s17 = inlined_call_operand.vmem [shape: bf16[128,128], index: 17, kind: input, shape index: {}]   ;;  %s5658_s18 = inlined_call_operand.vmem [shape: f32[1,128], index: 18, kind: input, shape index: {}]   ;;  %s5659_s19 = inlined_call_operand.vmem [shape: f32[128,1], index: 19, kind: input, shape index: {}]   ;;  %s5660_s20 = inlined_call_operand.<no memory space> [shape: f32[1,1], index: 20, kind: input, shape index: {}]   ;;  %s5661_s21 = inlined_call_operand.vmem [shape: f32[2,1], index: 21, kind: output, shape index: {}]  }
   0x1   :  { %5672 = sst [smem:[#allocation14_spill]] %s5640_s0  ;;  %v26_v0 = vstv %s5660_s20 }
   0x2   :  { %5673 = sst [smem:[#allocation15_spill]] %s5641_s1  ;;  %27 = vst [vmem:[#allocation3] sm:$0x1] %v26_v0 }
   0x3   :  { %5674 = sst [smem:[#allocation16_spill]] %s5642_s2 }
   0x4   :  { %5675 = sst [smem:[#allocation17_spill]] %s5643_s3 }
   0x5   :  { %5676 = sst [smem:[#allocation18_spill]] %s5644_s4 }
   0x6   :  { %5677 = sst [smem:[#allocation19_spill]] %s5645_s5 }
   0x7   :  { %5678 = sst [smem:[#allocation20_spill]] %s5647_s7 }
   0x8   :  { %5679 = sst [smem:[#allocation21_spill]] %s5651_s11 }
   0x9   :  { %5680 = sst [smem:[#allocation22_spill]] %s5653_s13 }
   0xa   :  { %5681 = sst [smem:[#allocation23_spill]] %s5657_s17 }
   0xb   :  { %5682 = sst [smem:[#allocation24_spill]] %s5658_s18 }
   0xc   :  { %5683 = sst [smem:[#allocation25_spill]] %s5659_s19 }
   0xd   :  { %5684 = sst [smem:[#allocation26_spill]] %s5661_s21 }
   0xe   :  { %28 = vsyncpa [#allocation5], 0 }
   0xf   :  { %30 = vsyncpa [#allocation5 + $0x1], 0 }
  0x10   :  { %31 = vsyncpa [#allocation7], 0 }
  0x11   :  { %33 = vsyncpa [#allocation7 + $0x1], 0  ;;  %s4906_s26 = smov 0   ;;  %s4908_s27 = smov 0  }
  0x12   :  { %s4910_s3 = smov 0   ;;  %s4912_s28 = smov 0  }
  0x13 LB: > { %5685 = sst [smem:[#allocation10_spill]] %s4768_s27  ;;  %s4925_s20 = sadd.s32 4294967295, %s4776_s28   ;;  %s4776_s28 = sphi %s4912_s28, %s5712_s28   ;;  %s4772_s3 = sphi %s4910_s3, %s5715_s3   ;;  %s4768_s27 = sphi %s4908_s27, %s5714_s27   ;;  %s4764_s26 = sphi %s4906_s26, %s5713_s26  }
  0x14   : > { %5686 = sst [smem:[#allocation11_spill]] %s4772_s3  ;;  %s4928_s29 = sadd.s32 1, %s4776_s28  }
  0x15   : > { %5687 = sst [smem:[#allocation12_spill]] %s4928_s29  ;;  %s304_s0 = ssub.s32 %s4776_s28, %s4928_s29 }
  0x16   : > { %s307_s4 = sadd.s32 1, %s4772_s3  ;;  %p305_p0 = scmp.eq.s32.totalorder %s304_s0, 0 }
  0x17   : > { %p314_p1 = scmp.ne.s32.totalorder %s4772_s3, %s4768_s27  ;;  %p315_p2 = scmp.eq.s32.totalorder %s4776_s28, 0 }
  0x18   : > { %p320_p3 = scmp.ne.s32.totalorder %s4768_s27, %s4764_s26  ;;  %p321_p5 = scmp.eq.s32.totalorder %s4925_s20, 0 }
  0x19   : > { %s4938_s30 = scalar_select %p305_p0, %s4772_s3, %s307_s4  }
  0x1a   : > { %p316_p4 = por %p315_p2, %p314_p1  ;;  %p4427_p6 = scmp.lt.s32.totalorder %s4776_s28, 2 }
  0x1b   : > { %5688 = sst [smem:[#allocation13_spill]] %s4938_s30  ;;  %p4942_p7 = por %p321_p5, %p320_p3 }
  0x1c   : > { %s4947_s22 = sand.u32 1, %s4772_s3   ;;  %s5664_s1 = sshll.u32 %s4776_s28, 12 }
  0x1d   : > { %s5689_s5 = scalar_select %p4942_p7, 1, 0 }
  0x1e   : > { %s5663_s23 = sshll.u32 %s4947_s22, 8  ;;  %s5690_s11 = sld [smem:[#allocation21_spill]] }
  0x1f   : > { %s651_s26 = scalar_lea.vmem [#allocation4], %s5663_s23  ;;  %p4962_p8 = pnand %p4427_p6, %p316_p4 }
  0x20   : > { %s658_s0 = sshll.u32 %s651_s26, 4  ;;  %s4960_s0 = int_to_ptr.vmem [resolvable:$true] %s658_s0 }
  0x21   : > { %p4680_p11 = pneg %p4962_p8 }
  0x24   : > { %s4956_s25 = scalar_lea.hbm %s5690_s11, %s5664_s1  ;;  %s4683_s23 = scalar_lea.hbm %s5690_s11, 8192 }
  0x25   : > { %s4678_s24 = scalar_lea.hbm %s4956_s25, 4096  ;;  %p4684_p0 = scmp.lt.u32.totalorder %s4956_s25, %s5690_s11 }
  0x26   : > { %p4679_p10 = scmp.ne.s32.totalorder %s4956_s25, %s4678_s24  ;;  %p4685_p1 = scmp.lt.u32.totalorder %s4683_s23, %s4678_s24 }
  0x27   : > { %p4687_p3 = scmp.lt.u32.totalorder %s4678_s24, %s4956_s25 }
  0x28   : > { %p4681_p12 = pnand %p4680_p11, %p4679_p10  ;;  %p4686_p2 = por %p4685_p1, %p4684_p0 }
  0x2a   : > { %p4682_p13 = pneg %p4681_p12  ;;  %p4688_p4 = por %p4687_p3, %p4686_p2 }
  0x2c   : > { %p4689_p5 = pnand %p4688_p4, %p4682_p13 }
  0x2e   : > { %4692 = shalt.err (!%p4689_p5)
}
  0x2f   : > { %s4693_s30 = scalar_lea.vmem %s4960_s0, 4096  ;;  %s4778_s2 = smov [#allocation4]  }
  0x30   : > { %p4694_p6 = scmp.ne.s32.totalorder %s4960_s0, %s4693_s30  ;;  %s4698_s26 = sshll.u32 %s4778_s2, 4  ;;  %s4699_s26 = int_to_ptr.vmem [resolvable:$false] %s4698_s26 }
  0x31   : > { %s4700_s3 = scalar_lea.vmem %s4699_s26, 8192  ;;  %p4701_p9 = scmp.lt.s32.totalorder %s4960_s0, %s4699_s26 }
  0x32   : > { %p4696_p10 = pnand %p4694_p6, %p4680_p11  ;;  %p4702_p0 = scmp.lt.s32.totalorder %s4700_s3, %s4693_s30 }
  0x34   : > { %p4697_p12 = pneg %p4696_p10  ;;  %p4703_p1 = por %p4702_p0, %p4701_p9 }
  0x36   : > { %p4704_p2 = pnand %p4703_p1, %p4697_p12 }
  0x38   : > { %4707 = shalt.err (!%p4704_p2)
}
  0x39   : > { %s4779_s23 = smov 256   ;;  %s4780_s1 = smov 16  }
  0x3a   : > { %s5692_s24 = scalar_lea.sflag [#allocation5], %s4947_s22  ;;  %p712_p13 = scmp.lt.s32.totalorder %s4776_s28, 3 }
  0x3b   : > { %4423 = dma.hbm_to_vmem [thread:$0]  (!%p4962_p8), %s4956_s25, 4096, %s4960_s0, %s5692_s24, %s4779_s23, %s4779_s23, %s4780_s1  }
  0x3c   : > { %s5693_s30 = sshll.u32 %s4776_s28, 12  ;;  %s5694_s13 = sld [smem:[#allocation22_spill]] }
  0x3d   : > { %p5695_p9 = scmp.ge.s32.totalorder %s4776_s28, 1  ;;  %s5697_s29 = sshll.u32 %s4947_s22, 8 }
  0x3e   : > { %s679_s21 = scalar_lea.vmem [#allocation6], %s5697_s29  ;;  %s676_s25 = scalar_lea.sflag [#allocation7], %s4947_s22 }
  0x3f   : > { %p5005_p3 = pnand %p5695_p9, %p712_p13  ;;  %s686_s18 = sshll.u32 %s679_s21, 4  ;;  %s5011_s18 = int_to_ptr.vmem [resolvable:$true] %s686_s18 }
  0x42   : > { %s5001_s3 = scalar_lea.hbm %s5694_s13, %s5693_s30  ;;  %s4713_s1 = scalar_lea.hbm %s5694_s13, 8192 }
  0x43   : > { %s4708_s0 = scalar_lea.hbm %s5001_s3, 4096  ;;  %p4714_p10 = scmp.lt.u32.totalorder %s5001_s3, %s5694_s13 }
  0x44   : > { %p4709_p4 = scmp.ne.s32.totalorder %s5001_s3, %s4708_s0  ;;  %p4715_p12 = scmp.lt.u32.totalorder %s4713_s1, %s4708_s0 }
  0x45   : > { %p4717_p1 = scmp.lt.u32.totalorder %s4708_s0, %s5001_s3 }
  0x46   : > { %p4711_p5 = pnand %p4709_p4, %p4680_p11  ;;  %p4716_p0 = por %p4715_p12, %p4714_p10 }
  0x48   : > { %p4712_p6 = pneg %p4711_p5  ;;  %p4718_p2 = por %p4717_p1, %p4716_p0 }
  0x4a   : > { %p4719_p13 = pnand %p4718_p2, %p4712_p6 }
  0x4c   : > { %4722 = shalt.err (!%p4719_p13)
}
  0x4d   : > { %s4723_s21 = scalar_lea.vmem %s5011_s18, 4096  ;;  %s4781_s29 = smov [#allocation6]  }
  0x4e   : > { %p4724_p9 = scmp.ne.s32.totalorder %s5011_s18, %s4723_s21  ;;  %s4728_s2 = sshll.u32 %s4781_s29, 4  ;;  %s4729_s2 = int_to_ptr.vmem [resolvable:$false] %s4728_s2 }
  0x4f   : > { %s4730_s26 = scalar_lea.vmem %s4729_s2, 8192  ;;  %p4731_p7 = scmp.lt.s32.totalorder %s5011_s18, %s4729_s2 }
  0x50   : > { %p4726_p4 = pnand %p4724_p9, %p4680_p11  ;;  %p4732_p10 = scmp.lt.s32.totalorder %s4730_s26, %s4723_s21 }
  0x52   : > { %p4727_p5 = pneg %p4726_p4  ;;  %p4733_p12 = por %p4732_p10, %p4731_p7 }
  0x54   : > { %p4734_p0 = pnand %p4733_p12, %p4727_p5 }
  0x56   : > { %4737 = shalt.err (!%p4734_p0)
}
  0x57   : > { %s4782_s0 = smov 64   ;;  %s4783_s28 = smov 4  }
  0x58   : > { %4426 = dma.hbm_to_vmem [thread:$0]  (!%p4962_p8), %s5001_s3, 4096, %s5011_s18, %s676_s25, %s4782_s0, %s4782_s0, %s4783_s28  }
  0x59   : > { %716 = sbr.rel (%p5005_p3) target bundleno = 5142 (0x1416), region = 104  ;;  %s718_s23 = sand.u32 (!%p5005_p3), 1, %s4768_s27  }
  0x5a   : > { %s3930_s1 = sshll.u32 (!%p5005_p3), %s718_s23, 8  ;;  %s719_s24 = scalar_lea.sflag (!%p5005_p3), [#allocation5], %s718_s23 }
  0x5b   : > { %s5042_s30 = scalar_lea.vmem (!%p5005_p3), [#allocation4], %s3930_s1  ;;  %p5698_p7 = scmp.ne.s32.totalorder (!%p5005_p3), %s5689_s5, 0 }
  0x60   : > { %4755 = dma.done.wait (%p5698_p7), %s719_s24, 4096  }
  0x61   : > { %4757 = vsyncadd (%p5698_p7), %s719_s24, 4294963200  ;;  %s728_s21 = scalar_lea.sflag [#allocation7], %s718_s23  ;;  %s5048_s4 = scalar_lea.vmem [#allocation6], %s3930_s1 }
  0x62   : > { %4759 = dma.done.wait (%p5698_p7), %s728_s21, 4096  }
  0x63   : > { %4761 = vsyncadd (%p5698_p7), %s728_s21, 4294963200  ;;  %p826_p8 = scmp.lt.s32.totalorder %s4925_s20, 1  ;;  %s5699_s7 = sld [smem:[#allocation20_spill]] }
  0x64   : > { %s5700_s0 = sld [smem:[#allocation19_spill]]  ;;  %p3936_p11 = scmp.ne.s32.totalorder %s4925_s20, 0 }
  0x65   : > { %s5056_s11 = scalar_select %p826_p8, %s4925_s20, 1 }
  0x66   : > { %866 = sbr.rel (%p3936_p11) target bundleno = 432 (0x1b0), region = 116  ;;  %s5703_s19 = sld [smem:[#allocation18_spill]] (!%p3936_p11) }
  0x67   : > { %s4414_s18 = smul.u32 192, %s5056_s11  ;;  %s4081_s22 = sshll.u32 %s5056_s11, 6 }
  0x68   : > { %s4415_s3 = smul.u32 3, %s5056_s11  ;;  %s3935_s2 = sshll.u32 %s5056_s11, 2 }
  0x69   : > { %s5064_s29 = scalar_lea.vmem %s5699_s7, %s4081_s22  ;;  %s848_s7 = scalar_lea.vmem %s5650_s10, %s5056_s11 }
  0x6a   : > { %s5069_s28 = scalar_lea.vmem %s5700_s0, %s4414_s18  ;;  %s5078_s27 = scalar_lea.vmem %s5646_s6, %s4415_s3 }
  0x6b   : > { %s5092_s0 = scalar_lea.vmem %s5652_s12, %s3935_s2  ;;  %s855_s13 = scalar_lea.vmem %s5654_s14, %s5056_s11 }
  0x6c   : > { %s858_s24 = scalar_lea.vmem %s5655_s15, %s5056_s11  ;;  %s861_s5 = scalar_lea.vmem %s5656_s16, %s5056_s11  ;;  %v3938_v20 = vld [vmem:[%s5703_s19] ss:$0 sm:$0xff] (!%p3936_p11) }
  0x6d   : > { %s5701_s18 = sld [smem:[#allocation14_spill]]  ;;  %s5702_s3 = sld [smem:[#allocation17_spill]] }
  0x73   : > { %v867_v1 = vld [vmem:[%s5701_s18] sm:$0xff]  ;;  %v868_v2 = vld [vmem:[%s5701_s18 + $0x8] sm:$0xff] }
  0x74   : > { %871 = vadd.xlane.f32.xlu0 %v867_v1  ;;  %v3937_v18 = vld [vmem:[%s5702_s3] ss:$0 sm:$0xff] }
  0x78   : > { %873 = vadd.xlane.f32.xlu0 %v868_v2 }
 0x101   : > { %v872_v3 = vpop.xlane.xlu0 %871 }
 0x102   : > { %v876_v4 = vmul.f32 0.0078125, %v872_v3 }
 0x104   : > { %v878_v5 = vsub.f32 %v867_v1, %v876_v4 }
 0x105   : > { %v874_v6 = vpop.xlane.xlu0 %873 }
 0x106   : > { %v877_v7 = vmul.f32 0.0078125, %v874_v6  ;;  %v880_v8 = vmul.f32 %v878_v5, %v878_v5 }
 0x108   : > { %v879_v9 = vsub.f32 %v868_v2, %v877_v7  ;;  %882 = vadd.xlane.f32.xlu1 %v880_v8 }
 0x10a   : > { %v881_v10 = vmul.f32 %v879_v9, %v879_v9 }
 0x10c   : > { %884 = vadd.xlane.f32.xlu1 %v881_v10 }
 0x195   : > { %v883_v11 = vpop.xlane.xlu1 %882 }
 0x196   : > { %v886_v12 = vmul.f32 0.0078125, %v883_v11 }
 0x198   : > { %v888_v13 = vadd.f32 1e-12, %v886_v12 }
 0x199   : > { %v885_v14 = vpop.xlane.xlu1 %884 }
 0x19a   : > { %4473 = vrsqrt.f32 %v888_v13  ;;  %v887_v15 = vmul.f32 0.0078125, %v885_v14 }
 0x19c   : > { %v889_v16 = vadd.f32 1e-12, %v887_v15 }
 0x19e   : > { %4475 = vrsqrt.f32 %v889_v16 }
 0x1a4   : > { %v4474_v17 = vpop.eup %4473 }
 0x1a5   : > { %v892_v19 = vmul.f32 %v4474_v17, %v878_v5 }
 0x1a7   : > { %v900_v21 = vmul.f32 %v3937_v18, %v892_v19 }
 0x1a8   : > { %v4476_v22 = vpop.eup %4475 }
 0x1a9   : > { %v908_v23 = vadd.f32 %v3938_v20, %v900_v21  ;;  %v893_v24 = vmul.f32 %v4476_v22, %v879_v9 }
 0x1ab   : > { %910 = vst [vmem:[#allocation2] sm:$0xff] %v908_v23  ;;  %v901_v25 = vmul.f32 %v3937_v18, %v893_v24 }
 0x1ad   : > { %v909_v26 = vadd.f32 %v3938_v20, %v901_v25 }
 0x1af   : > { %911 = vst [vmem:[#allocation2 + $0x8] sm:$0xff] %v909_v26 }
 0x1b0 PF: > { %v4492_v27 = vld [vmem:[%s5069_s28 + $0x4] ss:$12 sps:$4 sm:$0xff]   ;;  %v4494_v28 = vld [vmem:[%s5069_s28] ss:$12 sps:$4 sm:$0xff]   ;;  %v4784_v29 = vmov 0   ;;  %v4785_v30 = vmov 0.0   ;;  %v949_v56 = vlaneseq  ;;  %s5705_s1 = scalar_lea.vmem %s5648_s8, %s5056_s11  ;;  %s5706_s21 = scalar_lea.vmem %s5649_s9, %s5056_s11 }
 0x1b1   : > { %1124 = vmatprep.mubr.bf16.mxu0 %v4784_v29  ;;  %4205 = vmatprep.subr.bf16.mxu1 %v4785_v30  ;;  %v4495_v31 = vld [vmem:[%s5069_s28 + $0x1c] ss:$12 sps:$4 sm:$0xff]   ;;  %vm4786_vm0 = vmmov 0   ;;  %v4497_v32 = vld [vmem:[%s5069_s28 + $0x18] ss:$12 sps:$4 sm:$0xff]   ;;  %vm1177_vm1 = vcmask 261120  }
 0x1b2   : > { %1092 = vmatprep.subr.bf16.mxu0 %v4492_v27  ;;  %4221 = vmatprep.mubr.msk.bf16.mxu1 %vm4786_vm0, %v4785_v30  ;;  %v4498_v33 = vld [vmem:[%s5069_s28 + $0x34] ss:$12 sps:$4 sm:$0xff]   ;;  %v4500_v34 = vld [vmem:[%s5069_s28 + $0x30] ss:$12 sps:$4 sm:$0xff]   ;;  %v4501_v35 = vld [vmem:[%s5069_s28 + $0x4c] ss:$12 sps:$4 sm:$0xff]  }
 0x1b3   : > { %1093 = vmatpush1.bf16.msra.mxu0 %v4494_v28  ;;  %v4503_v36 = vld [vmem:[%s5069_s28 + $0x48] ss:$12 sps:$4 sm:$0xff]   ;;  %v4504_v37 = vld [vmem:[%s5069_s28 + $0x64] ss:$12 sps:$4 sm:$0xff]   ;;  %v4517_v39 = vld [vmem:[%s5069_s28 + $0x20] ss:$12 sps:$4 sm:$0xff]  }
 0x1b4   : > { %1094 = vmatprep.subr.bf16.mxu0 %v4495_v31  ;;  %v4516_v38 = vld [vmem:[%s5069_s28 + $0x8] ss:$12 sps:$4 sm:$0xff]   ;;  %v4506_v40 = vld [vmem:[%s5069_s28 + $0x60] ss:$12 sps:$4 sm:$0xff]   ;;  %v4518_v42 = vld [vmem:[%s5069_s28 + $0x38] ss:$12 sps:$4 sm:$0xff]  }
 0x1b5   : > { %4206 = vmatpush3.bf16.msra.mxu1 %v4516_v38  ;;  %v4507_v41 = vld [vmem:[%s5069_s28 + $0x7c] ss:$12 sps:$4 sm:$0xff]   ;;  %v4509_v43 = vld [vmem:[%s5069_s28 + $0x78] ss:$12 sps:$4 sm:$0xff]   ;;  %v4510_v44 = vld [vmem:[%s5069_s28 + $0x94] ss:$12 sps:$4 sm:$0xff]  }
 0x1b6   : > { %4207 = vmatprep.subr.bf16.mxu1 %v4785_v30  ;;  %v4519_v45 = vld [vmem:[%s5069_s28 + $0x50] ss:$12 sps:$4 sm:$0xff]   ;;  %v4513_v47 = vld [vmem:[%s5069_s28 + $0xac] ss:$12 sps:$4 sm:$0xff]   ;;  %v4520_v48 = vld [vmem:[%s5069_s28 + $0x68] ss:$12 sps:$4 sm:$0xff]  }
 0x1b7   : > { %1095 = vmatpush1.bf16.msra.mxu0 %v4497_v32  ;;  %v4512_v46 = vld [vmem:[%s5069_s28 + $0x90] ss:$12 sps:$4 sm:$0xff]   ;;  %v4515_v49 = vld [vmem:[%s5069_s28 + $0xa8] ss:$12 sps:$4 sm:$0xff]   ;;  %v5147_v50 = vld [vmem:[#allocation2] sm:$0xff]  ;;  %v5166_v57 = vshrl.u32 %v949_v56, 7 }
 0x1b8   : > { %1096 = vmatprep.subr.bf16.mxu0 %v4498_v33  ;;  %v5149_v51 = vld [vmem:[#allocation2 + $0x8] sm:$0xff]  ;;  %v4522_v54 = vld [vmem:[%s5069_s28 + $0x98] ss:$12 sps:$4 sm:$0xff]   ;;  %v4523_v55 = vld [vmem:[%s5069_s28 + $0xb0] ss:$12 sps:$4 sm:$0xff]   ;;  %s5704_s25 = sld [smem:[#allocation15_spill]] }
 0x1b9   : > { %4208 = vmatpush3.bf16.msra.mxu1 %v4517_v39  ;;  %v4521_v52 = vld [vmem:[%s5069_s28 + $0x80] ss:$12 sps:$4 sm:$0xff]   ;;  %v914_v53 = vpack.c.bf16 %v5149_v51, %v5147_v50  ;;  %v5169_v58 = vsub.s32 1, %v5166_v57  ;;  %v5173_v60 = vsub.s32 0, %v5166_v57  ;;  %s4787_s28 = smov 96   ;;  %v959_v5 = vsub.s32 2, %v5166_v57 }
 0x1ba   : > { %4209 = vmatprep.subr.bf16.mxu1 %v4785_v30  ;;  %v947_v59 = vld [vmem:[%s5078_s27] sm:$0x7]  ;;  %vm1260_vm2 = vcmask 64512   ;;  %s4788_s2 = smov 64   ;;  %s4789_s26 = smov 32   ;;  %vm1860_vm3 = vcmask 523264  }
 0x1bb   : > { %1097 = vmatpush1.bf16.msra.mxu0 %v4500_v34  ;;  %v956_v61 = vrot.slane %v947_v59, %v5169_v58  ;;  %v952_v63 = vrot.slane %v947_v59, %v5173_v60  ;;  %v960_v8 = vrot.slane %v947_v59, %v959_v5  ;;  %vm1862_vm4 = vcmask 785408   ;;  %p4065_p3 = scmp.ne.s32.totalorder %s4925_s20, 1 }
 0x1bc   : > { %1098 = vmatprep.subr.bf16.mxu0 %v4501_v35  ;;  %vm4791_vm5 = vmmov (!%p4065_p3), 0   ;;  %vm3474_vm6 = vcmask (!%p4065_p3), 130048   ;;  %s5709_s22 = sld [smem:[#allocation25_spill]] (!%p4065_p3)  ;;  %s5710_s17 = sld [smem:[#allocation24_spill]] (!%p4065_p3)  ;;  %vm3754_vm7 = vcmask (!%p4065_p3), 1024  }
 0x1bd   : > { %4210 = vmatpush3.bf16.msra.mxu1 %v4518_v42 }
 0x1be   : > { %4211 = vmatprep.subr.bf16.mxu1 %v4785_v30  ;;  %v5215_v15 = vld [vmem:[%s5704_s25] sm:$0x3]  ;;  %s5707_s25 = sld [smem:[#allocation16_spill]] (!%p4065_p3) }
 0x1bf   : > { %1099 = vmatpush1.bf16.msra.mxu0 %v4503_v36  ;;  %v5219_v16 = vrot.slane %v5215_v15, %v5173_v60 }
 0x1c0   : > { %1100 = vmatprep.subr.bf16.mxu0 %v4504_v37 }
 0x1c1   : > { %4212 = vmatpush3.bf16.msra.mxu1 %v4519_v45 }
 0x1c2   : > { %4213 = vmatprep.subr.bf16.mxu1 %v4785_v30 }
 0x1c3   : > { %1101 = vmatpush1.bf16.msra.mxu0 %v4506_v40 }
 0x1c4   : > { %1102 = vmatprep.subr.bf16.mxu0 %v4507_v41 }
 0x1c5   : > { %4214 = vmatpush3.bf16.msra.mxu1 %v4520_v48 }
 0x1c6   : > { %4215 = vmatprep.subr.bf16.mxu1 %v4785_v30 }
 0x1c7   : > { %1103 = vmatpush1.bf16.msra.mxu0 %v4509_v43 }
 0x1c8   : > { %1104 = vmatprep.subr.bf16.mxu0 %v4510_v44 }
 0x1c9   : > { %4216 = vmatpush3.bf16.msra.mxu1 %v4521_v52 }
 0x1ca   : > { %4217 = vmatprep.subr.bf16.mxu1 %v4785_v30 }
 0x1cb   : > { %1105 = vmatpush1.bf16.msra.mxu0 %v4512_v46 }
 0x1cc   : > { %1106 = vmatprep.subr.bf16.mxu0 %v4513_v47 }
 0x1cd   : > { %4218 = vmatpush3.bf16.msra.mxu1 %v4522_v54 }
 0x1ce   : > { %4219 = vmatprep.subr.bf16.mxu1 %v4785_v30 }
 0x1cf   : > { %1107 = vmatpush1.bf16.msra.mxu0 %v4515_v49 }
 0x1d0   : > { %4265 = vmatprep.subr.mxu0 %v4785_v30 }
 0x1d1   : > { %4220 = vmatpush3.bf16.msra.mxu1 %v4523_v55 }
 0x1d2   : > { %1125 = vmatmul.mubr.bf16.vlgmr.msra.gmra.mrb[0].mxu0 %v914_v53  ;;  %4225 = vmatprep.subr.mxu1 %v4785_v30 }
 0x1d3   : > { %4267 = vmatprep.mubr.msk.f32.mxu0 %vm4786_vm0, %v4785_v30 }
 0x1d4   : > { %4222 = vmatmul.mubr.bf16.vlgmr.msra.gmra.mrb[0].mxu1 %v914_v53 }
 0x1d5   : > { %4227 = vmatprep.mubr.msk.f32.mxu1 %vm4786_vm0, %v4785_v30 }
 0x2a5   : > { %v1126_v62 = vpop.f32.mrb[0].mxu0 }
 0x2a6   : > { %v1128_v0 = vpop.f32.mrb[1].mxu0  ;;  %v5186_v6 = vadd.f32 %v1126_v62, %v952_v63 }
 0x2a7   : > { %v5177_v1 = vadd.f32 %v1128_v0, %v956_v61  ;;  %v1130_v2 = vpop.f32.mrb[2].mxu0  ;;  %v1169_v9 = vpop.f32.mrb[0].mxu1 }
 0x2a8   : > { %v1132_v3 = vpop.f32.mrb[3].mxu0  ;;  %v5191_v7 = vadd.f32 %v1130_v2, %v952_v63  ;;  %v5206_v10 = vadd.f32 %v1169_v9, %v960_v8  ;;  %v4223_v11 = vpop.f32.mrb[1].mxu1 }
 0x2a9   : > { %v5179_v4 = vadd.f32 %v1132_v3, %v956_v61  ;;  %1347 = vrot.lane.b32.xlu1 %v5177_v1, %s4787_s28  ;;  %4226 = vmatpush3.xpose.msk.msra.mxu1 %vm1177_vm1, %v5177_v1  ;;  %v1172_v12 = vpop.f32.mrb[2].mxu1 }
 0x2aa   : > { %4230 = vmatprep.subr.mxu1 %v4785_v30  ;;  %v5208_v13 = vadd.f32 %v1172_v12, %v960_v8  ;;  %v4224_v14 = vpop.f32.mrb[3].mxu1 }
 0x2ab   : > { %4266 = vmatpush3.xpose.msk.msra.mxu0 %vm1177_vm1, %v5179_v4 }
 0x2ac   : > { %4228 = vmatmul.mubr.msk.f32.vlgmr.msra.gmra.mrb[4].mxu1 %vm1177_vm1, %v5186_v6  ;;  %4275 = vmatprep.subr.mxu0 %v4785_v30 }
 0x2ad   : > { %1345 = vrot.lane.b32.xlu1 %v5186_v6, %s4787_s28  ;;  %4232 = vmatprep.mubr.msk.f32.mxu1 %vm4786_vm0, %v4785_v30 }
 0x2ae   : > { %4268 = vmatmul.mubr.msk.f32.vlgmr.msra.gmra.mrb[4].mxu0 %vm1177_vm1, %v5191_v7  ;;  %4231 = vmatpush3.msra.mxu1 %v5206_v10 }
 0x2af   : > { %4277 = vmatprep.mubr.msk.f32.mxu0 %vm4786_vm0, %v4785_v30  ;;  %4235 = vmatprep.subr.mxu1 %v4785_v30 }
 0x31b   : > { %v1348_v33 = vpop.permute.xlu1 %1347 }
 0x31f   : > { %v1346_v35 = vpop.permute.xlu1 %1345 }
 0x37f   : > { %v1250_v17 = vpop.f32.mrb[4].mxu1 }
 0x380   : > { %v1254_v18 = vmul.f32 0.17677669, %v1250_v17  ;;  %v4229_v19 = vpop.f32.mrb[5].mxu1 }
 0x381   : > { %v5221_v20 = vpop.f32.mrb[4].mxu0 }
 0x382   : > { %v4269_v21 = vpop.f32.mrb[5].mxu0  ;;  %v1259_v22 = vadd.f32 %v5219_v16, %v1254_v18  ;;  %v1940_v3 = vmul.f32 0.17677669, %v5221_v20 }
 0x384   : > { %v1261_v23 = vsel %vm1260_vm2, %v1259_v22, -inf }
 0x385   : > { %1262 = vmax.xlane.f32.xlu0 %v1261_v23 }
 0x412   : > { %v1263_v24 = vpop.xlane.xlu0 %1262 }
 0x413   : > { %v1264_v25 = vsub.f32 %v1259_v22, %v1263_v24 }
 0x415   : > { %v1265_v26 = vmul.f32 1.442695, %v1264_v25 }
 0x417   : > { %4612 = vpow2.f32 %v1265_v26 }
 0x421   : > { %v4613_v27 = vpop.eup %4612 }
 0x422   : > { %v1267_v28 = vsel %vm1260_vm2, %v4613_v27, 0.0 }
 0x423   : > { %1268 = vadd.xlane.f32.xlu0 %v1267_v28 }
 0x4b0   : > { %v1269_v31 = vpop.xlane.xlu0 %1268 }
 0x4b1   : > { %4614 = vrcp.f32 %v1269_v31 }
 0x4bb   : > { %v4615_v32 = vpop.eup %4614 }
 0x4bc   : > { %v1271_v34 = vmul.f32 %v4615_v32, %v4613_v27 }
 0x4be   : > { %4233 = vmatmul.mubr.msk.f32.vlgmr.msra.gmra.mrb[6].mxu1 %vm1260_vm2, %v1271_v34 }
 0x4bf   : > { %4236 = vmatpush3.xpose.msk.msra.mxu1 %vm1177_vm1, %v1348_v33  ;;  %4237 = vmatprep.mubr.msk.f32.mxu1 %vm4786_vm0, %v4785_v30 }
 0x4c0   : > { %4240 = vmatprep.subr.mxu1 %v4785_v30 }
 0x4c2   : > { %4238 = vmatmul.mubr.msk.f32.vlgmr.msra.gmra.mrb[8].mxu1 %vm1177_vm1, %v1346_v35 }
 0x4c3   : > { %4242 = vmatprep.mubr.msk.f32.mxu1 %vm4786_vm0, %v4785_v30 }
 0x591   : > { %v5234_v36 = vpop.f32.mrb[6].mxu1 }
 0x592   : > { %v4234_v37 = vpop.f32.mrb[7].mxu1 }
 0x595   : > { %v1419_v38 = vpop.f32.mrb[8].mxu1 }
 0x596   : > { %v1423_v39 = vmul.f32 0.17677669, %v1419_v38  ;;  %v4239_v40 = vpop.f32.mrb[9].mxu1 }
 0x598   : > { %v1424_v41 = vadd.f32 %v1423_v39, %v5219_v16 }
 0x59a   : > { %v1425_v42 = vsel %vm1260_vm2, %v1424_v41, -inf }
 0x59b   : > { %1426 = vmax.xlane.f32.xlu0 %v1425_v42 }
 0x5b1   : > { %1437 = vrot.lane.b32.xlu0 %v5206_v10, %s4787_s28 }
 0x5b5   : > { %1515 = vrot.lane.b32.xlu0 %v5177_v1, %s4788_s2 }
 0x5b9   : > { %1513 = vrot.lane.b32.xlu0 %v5186_v6, %s4788_s2 }
 0x628   : > { %v1427_v43 = vpop.xlane.xlu0 %1426 }
 0x629   : > { %v1428_v44 = vsub.f32 %v1424_v41, %v1427_v43 }
 0x62b   : > { %v1429_v45 = vmul.f32 1.442695, %v1428_v44 }
 0x62c   : > { %v1438_v46 = vpop.permute.xlu0 %1437 }
 0x62d   : > { %4616 = vpow2.f32 %v1429_v45  ;;  %4241 = vmatpush3.msra.mxu1 %v1438_v46 }
 0x62e   : > { %4245 = vmatprep.subr.mxu1 %v4785_v30 }
 0x630   : > { %v1516_v53 = vpop.permute.xlu0 %1515 }
 0x634   : > { %v1514_v55 = vpop.permute.xlu0 %1513 }
 0x637   : > { %v4617_v47 = vpop.eup %4616 }
 0x638   : > { %v1431_v48 = vsel %vm1260_vm2, %v4617_v47, 0.0 }
 0x639   : > { %1432 = vadd.xlane.f32.xlu1 %v1431_v48 }
 0x64a   : > { %1604 = vrot.lane.b32.xlu1 %v5206_v10, %s4788_s2 }
 0x64e   : > { %1682 = vrot.lane.b32.xlu1 %v5177_v1, %s4789_s26 }
 0x652   : > { %1680 = vrot.lane.b32.xlu1 %v5186_v6, %s4789_s26  ;;  %v5272_v6 = vrot.slane %v5215_v15, %v5169_v58 }
 0x654   : > { %v1945_v8 = vadd.f32 %v5272_v6, %v1940_v3 }
 0x656   : > { %2030 = vrot.lane.b32.xlu1 %v5191_v7, %s4787_s28  ;;  %v1946_v9 = vsel %vm1260_vm2, %v1945_v8, -inf }
 0x6c6   : > { %v1433_v49 = vpop.xlane.xlu1 %1432 }
 0x6c7   : > { %4618 = vrcp.f32 %v1433_v49 }
 0x6ca   : > { %v1605_v56 = vpop.permute.xlu1 %1604 }
 0x6ce   : > { %v1683_v11 = vpop.permute.xlu1 %1682 }
 0x6d1   : > { %v4619_v52 = vpop.eup %4618 }
 0x6d2   : > { %v1435_v54 = vmul.f32 %v4619_v52, %v4617_v47  ;;  %v1681_v14 = vpop.permute.xlu1 %1680 }
 0x6d4   : > { %4243 = vmatmul.mubr.msk.f32.vlgmr.msra.gmra.mrb[10].mxu1 %vm1260_vm2, %v1435_v54 }
 0x6d5   : > { %4246 = vmatpush3.xpose.msk.msra.mxu1 %vm1177_vm1, %v1516_v53  ;;  %4247 = vmatprep.mubr.msk.f32.mxu1 %vm4786_vm0, %v4785_v30 }
 0x6d6   : > { %4250 = vmatprep.subr.mxu1 %v4785_v30  ;;  %v2031_v20 = vpop.permute.xlu1 %2030 }
 0x6d8   : > { %4248 = vmatmul.mubr.msk.f32.vlgmr.msra.gmra.mrb[12].mxu1 %vm1177_vm1, %v1514_v55 }
 0x6d9   : > { %4251 = vmatpush3.msra.mxu1 %v1605_v56  ;;  %4252 = vmatprep.mubr.msk.f32.mxu1 %vm4786_vm0, %v4785_v30 }
 0x6da   : > { %4255 = vmatprep.subr.mxu1 %v4785_v30 }
 0x7a7   : > { %v5263_v59 = vpop.f32.mrb[10].mxu1 }
 0x7a8   : > { %v4244_v61 = vpop.f32.mrb[11].mxu1 }
 0x7ab   : > { %v1587_v62 = vpop.f32.mrb[12].mxu1 }
 0x7ac   : > { %v1591_v63 = vmul.f32 0.17677669, %v1587_v62  ;;  %v4249_v0 = vpop.f32.mrb[13].mxu1 }
 0x7ae   : > { %v1592_v1 = vadd.f32 %v1591_v63, %v5219_v16 }
 0x7b0   : > { %v1593_v2 = vsel %vm1260_vm2, %v1592_v1, -inf }
 0x7b1   : > { %1594 = vmax.xlane.f32.xlu0 %v1593_v2 }
 0x7c7   : > { %2032 = vrot.lane.b32.xlu0 %v5179_v4, %s4787_s28 }
 0x7e6   : > { %1947 = vmax.xlane.f32.xlu0 %v1946_v9 }
 0x83e   : > { %v1595_v12 = vpop.xlane.xlu0 %1594 }
 0x83f   : > { %v1596_v17 = vsub.f32 %v1592_v1, %v1595_v12 }
 0x841   : > { %v1597_v18 = vmul.f32 1.442695, %v1596_v17 }
 0x842   : > { %v2033_v19 = vpop.permute.xlu0 %2032 }
 0x843   : > { %4620 = vpow2.f32 %v1597_v18  ;;  %4276 = vmatpush3.xpose.msk.msra.mxu0 %vm1177_vm1, %v2033_v19 }
 0x844   : > { %4285 = vmatprep.subr.mxu0 %v4785_v30 }
 0x846   : > { %4278 = vmatmul.mubr.msk.f32.vlgmr.msra.gmra.mrb[6].mxu0 %vm1177_vm1, %v2031_v20 }
 0x847   : > { %4287 = vmatprep.mubr.msk.f32.mxu0 %vm4786_vm0, %v4785_v30 }
 0x84d   : > { %v4621_v15 = vpop.eup %4620 }
 0x84e   : > { %v1599_v21 = vsel %vm1260_vm2, %v4621_v15, 0.0 }
 0x84f   : > { %1600 = vadd.xlane.f32.xlu1 %v1599_v21 }
 0x860   : > { %2200 = vrot.lane.b32.xlu1 %v5179_v4, %s4788_s2 }
 0x864   : > { %2198 = vrot.lane.b32.xlu1 %v5191_v7, %s4788_s2 }
 0x868   : > { %2367 = vrot.lane.b32.xlu1 %v5179_v4, %s4789_s26 }
 0x86c   : > { %2365 = vrot.lane.b32.xlu1 %v5191_v7, %s4789_s26 }
 0x873   : > { %v1948_v34 = vpop.xlane.xlu0 %1947 }
 0x874   : > { %v1949_v35 = vsub.f32 %v1945_v8, %v1948_v34 }
 0x876   : > { %v1950_v38 = vmul.f32 1.442695, %v1949_v35 }
 0x8dc   : > { %v1601_v22 = vpop.xlane.xlu1 %1600 }
 0x8dd   : > { %4622 = vrcp.f32 %v1601_v22 }
 0x8de   : > { %4624 = vpow2.f32 %v1950_v38 }
 0x8e0   : > { %v2201_v23 = vpop.permute.xlu1 %2200 }
 0x8e1   : > { %4286 = vmatpush3.xpose.msk.msra.mxu0 %vm1177_vm1, %v2201_v23 }
 0x8e2   : > { %4295 = vmatprep.subr.mxu0 %v4785_v30 }
 0x8e4   : > { %v2199_v24 = vpop.permute.xlu1 %2198 }
 0x8e5   : > { %4288 = vmatmul.mubr.msk.f32.vlgmr.msra.gmra.mrb[8].mxu0 %vm1177_vm1, %v2199_v24 }
 0x8e6   : > { %4297 = vmatprep.mubr.msk.f32.mxu0 %vm4786_vm0, %v4785_v30 }
 0x8e7   : > { %v4623_v25 = vpop.eup %4622 }
 0x8e8   : > { %v1603_v26 = vmul.f32 %v4623_v25, %v4621_v15  ;;  %v2368_v27 = vpop.permute.xlu1 %2367  ;;  %v4625_v61 = vpop.eup %4624 }
 0x8e9   : > { %4296 = vmatpush3.xpose.msk.msra.mxu0 %vm1177_vm1, %v2368_v27  ;;  %v1952_v0 = vsel %vm1260_vm2, %v4625_v61, 0.0 }
 0x8ea   : > { %4253 = vmatmul.mubr.msk.f32.vlgmr.msra.gmra.mrb[14].mxu1 %vm1260_vm2, %v1603_v26  ;;  %4305 = vmatprep.subr.bf16.mxu0 %v4785_v30 }
 0x8eb   : > { %4256 = vmatpush3.xpose.msk.msra.mxu1 %vm1177_vm1, %v1683_v11  ;;  %4257 = vmatprep.mubr.msk.f32.mxu1 %vm4786_vm0, %v4785_v30 }
 0x8ec   : > { %v2366_v4 = vpop.permute.xlu1 %2365  ;;  %4260 = vmatprep.subr.mxu1 %v4785_v30 }
 0x8ed   : > { %4298 = vmatmul.mubr.msk.f32.vlgmr.msra.gmra.mrb[10].mxu0 %vm1177_vm1, %v2366_v4 }
 0x8ee   : > { %4258 = vmatmul.mubr.msk.f32.vlgmr.msra.gmra.mrb[16].mxu1 %vm1177_vm1, %v1681_v14  ;;  %4321 = vmatprep.mubr.msk.bf16.mxu0 %vm4786_vm0, %v4785_v30 }
 0x8ef   : > { %4262 = vmatprep.mubr.msk.f32.mxu1 %vm4786_vm0, %v4785_v30 }
 0x919   : > { %v2104_v7 = vpop.f32.mrb[6].mxu0 }
 0x91a   : > { %v2108_v28 = vmul.f32 0.17677669, %v2104_v7  ;;  %v4279_v31 = vpop.f32.mrb[7].mxu0 }
 0x91c   : > { %v2109_v32 = vadd.f32 %v2108_v28, %v5272_v6 }
 0x91e   : > { %v2110_v33 = vsel %vm1260_vm2, %v2109_v32, -inf }
 0x91f   : > { %2111 = vmax.xlane.f32.xlu0 %v2110_v33 }
 0x9ac   : > { %v2112_v37 = vpop.xlane.xlu0 %2111 }
 0x9ad   : > { %v2113_v40 = vsub.f32 %v2109_v32, %v2112_v37 }
 0x9af   : > { %v2114_v42 = vmul.f32 1.442695, %v2113_v40 }
 0x9b1   : > { %4626 = vpow2.f32 %v2114_v42  ;;  %v4524_v42 = vld [vmem:[%s5064_s29] sm:$0xff]  }
 0x9b2   : > { %4306 = vmatpush3.bf16.msra.mxu0 %v4524_v42 }
 0x9b3   : > { %4307 = vmatprep.subr.bf16.mxu0 %v4785_v30 }
 0x9b8   : > { %v2272_v39 = vpop.f32.mrb[8].mxu0 }
 0x9b9   : > { %v4289_v41 = vpop.f32.mrb[9].mxu0  ;;  %v2276_v49 = vmul.f32 0.17677669, %v2272_v39 }
 0x9bb   : > { %v2277_v63 = vadd.f32 %v2276_v49, %v5272_v6  ;;  %v4627_v2 = vpop.eup %4626  ;;  %v4529_v49 = vld [vmem:[%s5064_s29 + $0x28] sm:$0xff]  }
 0x9bc   : > { %v2116_v3 = vsel %vm1260_vm2, %v4627_v2, 0.0 }
 0x9bd   : > { %v5310_v43 = vpop.f32.mrb[14].mxu1  ;;  %v2278_v1 = vsel %vm1260_vm2, %v2277_v63, -inf }
 0x9be   : > { %v4254_v44 = vpop.f32.mrb[15].mxu1 }
 0x9bf   : > { %v4525_v44 = vld [vmem:[%s5064_s29 + $0x8] sm:$0xff]  }
 0x9c0   : > { %v2439_v45 = vpop.f32.mrb[10].mxu0  ;;  %4308 = vmatpush3.bf16.msra.mxu0 %v4525_v44 }
 0x9c1   : > { %v2443_v46 = vmul.f32 0.17677669, %v2439_v45  ;;  %v1754_v47 = vpop.f32.mrb[16].mxu1  ;;  %v4299_v48 = vpop.f32.mrb[11].mxu0  ;;  %v4526_v45 = vld [vmem:[%s5064_s29 + $0x10] sm:$0xff]   ;;  %4309 = vmatprep.subr.bf16.mxu0 %v4785_v30 }
 0x9c2   : > { %v1758_v52 = vmul.f32 0.17677669, %v1754_v47  ;;  %v4259_v53 = vpop.f32.mrb[17].mxu1  ;;  %v4528_v47 = vld [vmem:[%s5064_s29 + $0x20] sm:$0xff]  }
 0x9c3   : > { %v2444_v54 = vadd.f32 %v2443_v46, %v5272_v6  ;;  %v4527_v46 = vld [vmem:[%s5064_s29 + $0x18] sm:$0xff]  }
 0x9c4   : > { %v1759_v55 = vadd.f32 %v1758_v52, %v5219_v16  ;;  %4310 = vmatpush3.bf16.msra.mxu0 %v4526_v45  ;;  %v4546_v45 = vld [vmem:[%s5042_s30 + $0x44] ss:$16 sps:$4 sm:$0xff]  }
 0x9c5   : > { %v2445_v56 = vsel %vm1260_vm2, %v2444_v54, -inf  ;;  %4311 = vmatprep.subr.bf16.mxu0 %v4785_v30 }
 0x9c6   : > { %2446 = vmax.xlane.f32.xlu0 %v2445_v56  ;;  %v1760_v62 = vsel %vm1260_vm2, %v1759_v55, -inf }
 0x9c7   : > { %1761 = vmax.xlane.f32.xlu1 %v1760_v62 }
 0x9c8   : > { %4312 = vmatpush3.bf16.msra.mxu0 %v4527_v46  ;;  %v4549_v46 = vld [vmem:[%s5042_s30 + $0x4c] ss:$16 sps:$4 sm:$0xff]  }
 0x9c9   : > { %4313 = vmatprep.subr.bf16.mxu0 %v4785_v30 }
 0x9ca   : > { %1953 = vadd.xlane.f32.xlu0 %v1952_v0 }
 0x9cb   : > { %2279 = vmax.xlane.f32.xlu1 %v2278_v1 }
 0x9cc   : > { %4314 = vmatpush3.bf16.msra.mxu0 %v4528_v47  ;;  %v4544_v47 = vld [vmem:[%s5042_s30 + $0x40] ss:$16 sps:$4 sm:$0xff]  }
 0x9cd   : > { %4315 = vmatprep.subr.bf16.mxu0 %v4785_v30 }
 0x9cf   : > { %2117 = vadd.xlane.f32.xlu1 %v2116_v3 }
 0x9d0   : > { %4316 = vmatpush3.bf16.msra.mxu0 %v4529_v49  ;;  %v4552_v49 = vld [vmem:[%s5042_s30 + $0x64] ss:$16 sps:$4 sm:$0xff]  }
 0x9d1   : > { %4317 = vmatprep.subr.bf16.mxu0 %v4785_v30 }
 0xa53   : > { %v2447_v16 = vpop.xlane.xlu0 %2446 }
 0xa54   : > { %v2448_v8 = vsub.f32 %v2444_v54, %v2447_v16  ;;  %v1762_v9 = vpop.xlane.xlu1 %1761  ;;  %v4530_v54 = vld [vmem:[%s5064_s29 + $0x30] sm:$0xff]  }
 0xa55   : > { %v1763_v11 = vsub.f32 %v1759_v55, %v1762_v9  ;;  %4318 = vmatpush3.bf16.msra.mxu0 %v4530_v54  ;;  %v4553_v54 = vld [vmem:[%s5042_s30 + $0x68] ss:$16 sps:$4 sm:$0xff]  }
 0xa56   : > { %v2449_v12 = vmul.f32 1.442695, %v2448_v8  ;;  %4319 = vmatprep.subr.bf16.mxu0 %v4785_v30 }
 0xa57   : > { %v1764_v14 = vmul.f32 1.442695, %v1763_v11  ;;  %v1954_v26 = vpop.xlane.xlu0 %1953 }
 0xa58   : > { %4628 = vpow2.f32 %v2449_v12  ;;  %v2280_v17 = vpop.xlane.xlu1 %2279 }
 0xa59   : > { %v2281_v6 = vsub.f32 %v2277_v63, %v2280_v17  ;;  %4630 = vpow2.f32 %v1764_v14 }
 0xa5b   : > { %v2282_v18 = vmul.f32 1.442695, %v2281_v6 }
 0xa5c   : > { %v2118_v24 = vpop.xlane.xlu1 %2117 }
 0xa5d   : > { %4632 = vpow2.f32 %v2282_v18 }
 0xa62   : > { %v4629_v19 = vpop.eup %4628 }
 0xa63   : > { %v2451_v20 = vsel %vm1260_vm2, %v4629_v19, 0.0  ;;  %v4631_v15 = vpop.eup %4630 }
 0xa64   : > { %2452 = vadd.xlane.f32.xlu1 %v2451_v20  ;;  %v1766_v22 = vsel %vm1260_vm2, %v4631_v15, 0.0 }
 0xa67   : > { %v4633_v21 = vpop.eup %4632 }
 0xa68   : > { %1767 = vadd.xlane.f32.xlu1 %v1766_v22  ;;  %v2284_v23 = vsel %vm1260_vm2, %v4633_v21, 0.0 }
 0xa69   : > { %2285 = vadd.xlane.f32.xlu0 %v2284_v23 }
 0xa79   : > { %2122 = vrot.lane.b32.xlu1 %v5208_v13, %s4787_s28 }
 0xa7d   : > { %2289 = vrot.lane.b32.xlu1 %v5208_v13, %s4788_s2 }
 0xa7f   : > { %1771 = vrot.lane.b32.xlu0 %v5206_v10, %s4789_s26 }
 0xa83   : > { %2456 = vrot.lane.b32.xlu0 %v5208_v13, %s4789_s26 }
 0xaf1   : > { %v2453_v25 = vpop.xlane.xlu1 %2452 }
 0xaf5   : > { %v1768_v27 = vpop.xlane.xlu1 %1767 }
 0xaf6   : > { %4634 = vrcp.f32 %v1768_v27  ;;  %v2286_v4 = vpop.xlane.xlu0 %2285 }
 0xaf7   : > { %4636 = vrcp.f32 %v1954_v26 }
 0xaf8   : > { %4638 = vrcp.f32 %v2118_v24 }
 0xaf9   : > { %4640 = vrcp.f32 %v2286_v4  ;;  %v2123_v33 = vpop.permute.xlu1 %2122 }
 0xafa   : > { %v1772_v7 = vpop.permute.xlu0 %1771  ;;  %4642 = vrcp.f32 %v2453_v25 }
 0xafb   : > { %4261 = vmatpush3.msra.mxu1 %v1772_v7 }
 0xafc   : > { %4270 = vmatprep.subr.mxu1 %v4785_v30 }
 0xafe   : > { %v2457_v40 = vpop.permute.xlu0 %2456 }
 0xb00   : > { %v4635_v28 = vpop.eup %4634 }
 0xb01   : > { %v1770_v31 = vmul.f32 %v4635_v28, %v4631_v15  ;;  %v4637_v32 = vpop.eup %4636 }
 0xb02   : > { %v1956_v10 = vmul.f32 %v4637_v32, %v4625_v61  ;;  %v4639_v34 = vpop.eup %4638  ;;  %v4531_v61 = vld [vmem:[%s5064_s29 + $0x38] sm:$0xff]   ;;  %s5708_s29 = sld [smem:[#allocation23_spill]] (!%p4065_p3) }
 0xb03   : > { %4263 = vmatmul.mubr.msk.f32.vlgmr.msra.gmra.mrb[18].mxu1 %vm1260_vm2, %v1770_v31  ;;  %v2120_v35 = vmul.f32 %v4639_v34, %v4627_v2  ;;  %v4641_v37 = vpop.eup %4640  ;;  %4320 = vmatpush3.bf16.msra.mxu0 %v4531_v61  ;;  %v4532_v31 = vld [vmem:[%s5042_s30] ss:$16 sps:$4 sm:$0xff]   ;;  %v4534_v32 = vld [vmem:[%s5042_s30 + $0x4] ss:$16 sps:$4 sm:$0xff]  }
 0xb04   : > { %4271 = vmatpush3.msra.mxu1 %v5208_v13  ;;  %4272 = vmatprep.mubr.msk.f32.mxu1 %vm4786_vm0, %v4785_v30  ;;  %v2290_v13 = vpop.permute.xlu1 %2289  ;;  %v2288_v38 = vmul.f32 %v4641_v37, %v4633_v21  ;;  %v4643_v39 = vpop.eup %4642  ;;  %v4540_v34 = vld [vmem:[%s5042_s30 + $0x24] ss:$16 sps:$4 sm:$0xff]   ;;  %v4538_v37 = vld [vmem:[%s5042_s30 + $0x20] ss:$16 sps:$4 sm:$0xff]  }
 0xb05   : > { %4280 = vmatprep.subr.mxu1 %v4785_v30  ;;  %v2455_v41 = vmul.f32 %v4643_v39, %v4629_v19  ;;  %v4556_v61 = vld [vmem:[%s5042_s30 + $0x80] ss:$16 sps:$4 sm:$0xff]  }
 0xb07   : > { %4273 = vmatmul.mubr.msk.f32.vlgmr.msra.gmra.mrb[20].mxu1 %vm1260_vm2, %v1956_v10  ;;  %v4535_v10 = vld [vmem:[%s5042_s30 + $0x8] ss:$16 sps:$4 sm:$0xff]  }
 0xb08   : > { %4281 = vmatpush3.msra.mxu1 %v2123_v33  ;;  %4282 = vmatprep.mubr.msk.f32.mxu1 %vm4786_vm0, %v4785_v30  ;;  %v4537_v33 = vld [vmem:[%s5042_s30 + $0xc] ss:$16 sps:$4 sm:$0xff]  }
 0xb09   : > { %4290 = vmatprep.subr.mxu1 %v4785_v30  ;;  %2961 = vmatprep.subr.bf16.mxu0 %v4537_v33  ;;  %v4586_v33 = vld [vmem:[%s5048_s4 + $0x8] sm:$0xff]  }
 0xb0b   : > { %4283 = vmatmul.mubr.msk.f32.vlgmr.msra.gmra.mrb[22].mxu1 %vm1260_vm2, %v2120_v35  ;;  %v4543_v35 = vld [vmem:[%s5042_s30 + $0x2c] ss:$16 sps:$4 sm:$0xff]  }
 0xb0c   : > { %4291 = vmatpush3.msra.mxu1 %v2290_v13  ;;  %4292 = vmatprep.mubr.msk.f32.mxu1 %vm4786_vm0, %v4785_v30 }
 0xb0d   : > { %4300 = vmatprep.subr.mxu1 %v4785_v30 }
 0xb0f   : > { %4293 = vmatmul.mubr.msk.f32.vlgmr.msra.gmra.mrb[24].mxu1 %vm1260_vm2, %v2288_v38 }
 0xb10   : > { %4301 = vmatpush3.msra.mxu1 %v2457_v40  ;;  %4302 = vmatprep.mubr.msk.f32.mxu1 %vm4786_vm0, %v4785_v30 }
 0xb11   : > { %2918 = vmatprep.subr.bf16.mxu1 %v4534_v32  ;;  %v4584_v32 = vld [vmem:[%s5048_s4 + $0x48] sm:$0xff]  }
 0xb13   : > { %4303 = vmatmul.mubr.msk.f32.vlgmr.msra.gmra.mrb[26].mxu1 %vm1260_vm2, %v2455_v41 }
 0xb14   : > { %2950 = vmatprep.mubr.bf16.mxu1 %v4784_v29  ;;  %2919 = vmatpush1.bf16.msra.mxu1 %v4532_v31  ;;  %v4583_v31 = vld [vmem:[%s5048_s4 + $0x80] sm:$0xff]  }
 0xb15   : > { %2920 = vmatprep.subr.bf16.mxu1 %v4540_v34  ;;  %v4587_v34 = vld [vmem:[%s5048_s4 + $0x88] sm:$0xff]  }
 0xb18   : > { %2921 = vmatpush1.bf16.msra.mxu1 %v4538_v37  ;;  %v4589_v37 = vld [vmem:[%s5048_s4 + $0xd0] sm:$0xff]  }
 0xb19   : > { %2922 = vmatprep.subr.bf16.mxu1 %v4546_v45  ;;  %v4599_v45 = vld [vmem:[%s5048_s4 + $0xa0] sm:$0xff]  }
 0xb1c   : > { %2923 = vmatpush1.bf16.msra.mxu1 %v4544_v47  ;;  %v4601_v47 = vld [vmem:[%s5048_s4 + $0xe8] sm:$0xff]  }
 0xb1d   : > { %2924 = vmatprep.subr.bf16.mxu1 %v4552_v49  ;;  %v4603_v49 = vld [vmem:[%s5048_s4 + $0xa8] sm:$0xff]  }
 0xbd6   : > { %v1843_v48 = vpop.f32.mrb[18].mxu1 }
 0xbd7   : > { %v4264_v52 = vpop.f32.mrb[19].mxu1 }
 0xbd8   : > { %v4555_v52 = vld [vmem:[%s5042_s30 + $0x6c] ss:$16 sps:$4 sm:$0xff]  }
 0xbda   : > { %v2026_v53 = vpop.f32.mrb[20].mxu1 }
 0xbdb   : > { %v4274_v55 = vpop.f32.mrb[21].mxu1 }
 0xbdc   : > { %v4558_v55 = vld [vmem:[%s5042_s30 + $0x84] ss:$16 sps:$4 sm:$0xff]  }
 0xbde   : > { %v2194_v56 = vpop.f32.mrb[22].mxu1 }
 0xbdf   : > { %v4477_v62 = vpack.i.bf16 %v2194_v56, %v5263_v59  ;;  %v4284_v63 = vpop.f32.mrb[23].mxu1  ;;  %v4561_v56 = vld [vmem:[%s5042_s30 + $0x8c] ss:$16 sps:$4 sm:$0xff]  }
 0xbe0   : > { %v4564_v63 = vld [vmem:[%s5042_s30 + $0xa4] ss:$16 sps:$4 sm:$0xff]  }
 0xbe1   : > { %4478 = vrot.lane.b32.xlu1 %v4477_v62, %s4789_s26  ;;  %v4559_v62 = vld [vmem:[%s5042_s30 + $0x88] ss:$16 sps:$4 sm:$0xff]  }
 0xbe2   : > { %v2361_v0 = vpop.f32.mrb[24].mxu1 }
 0xbe3   : > { %v4482_v1 = vpack.i.bf16 %v2361_v0, %v5310_v43  ;;  %v4294_v2 = vpop.f32.mrb[25].mxu1  ;;  %v4567_v0 = vld [vmem:[%s5042_s30 + $0xac] ss:$16 sps:$4 sm:$0xff]  }
 0xbe4   : > { %v4565_v2 = vld [vmem:[%s5042_s30 + $0xa8] ss:$16 sps:$4 sm:$0xff]  }
 0xbe5   : > { %4483 = vrot.lane.b32.xlu0 %v4482_v1, %s4788_s2  ;;  %v4562_v1 = vld [vmem:[%s5042_s30 + $0xa0] ss:$16 sps:$4 sm:$0xff]  }
 0xbe6   : > { %v2528_v3 = vpop.f32.mrb[26].mxu1 }
 0xbe7   : > { %v4487_v16 = vpack.i.bf16 %v2528_v3, %v1843_v48  ;;  %v4304_v8 = vpop.f32.mrb[27].mxu1  ;;  %v4547_v48 = vld [vmem:[%s5042_s30 + $0x48] ss:$16 sps:$4 sm:$0xff]   ;;  %v4568_v3 = vld [vmem:[%s5042_s30 + $0xc0] ss:$16 sps:$4 sm:$0xff]  }
 0xbe8   : > { %v4571_v8 = vld [vmem:[%s5042_s30 + $0xc8] ss:$16 sps:$4 sm:$0xff]  }
 0xbe9   : > { %4488 = vrot.lane.b32.xlu1 %v4487_v16, %s4787_s28  ;;  %v4570_v16 = vld [vmem:[%s5042_s30 + $0xc4] ss:$16 sps:$4 sm:$0xff]  }
 0xc53   : > { %v4479_v30 = vpop.permute.xlu1 %4478 }
 0xc54   : > { %v4481_v11 = vunpack.i.h.bf16 %v4479_v30  ;;  %v4480_v12 = vunpack.i.l.bf16 %v4479_v30  ;;  %v4573_v30 = vld [vmem:[%s5042_s30 + $0xcc] ss:$16 sps:$4 sm:$0xff]  }
 0xc56   : > { %v2544_v43 = vsel %vm1177_vm1, %v2026_v53, %v4481_v11  ;;  %v1859_v6 = vsel %vm1177_vm1, %v5234_v36, %v4480_v12  ;;  %v3987_v36 = vld [vmem:[%s5705_s1] ss:$0 sm:$0xff]  ;;  %v4550_v53 = vld [vmem:[%s5042_s30 + $0x60] ss:$16 sps:$4 sm:$0xff]  }
 0xc57   : > { %v4484_v9 = vpop.permute.xlu0 %4483  ;;  %2925 = vmatpush1.bf16.msra.mxu1 %v4550_v53  ;;  %v4579_v11 = vld [vmem:[%s5042_s30 + $0xec] ss:$16 sps:$4 sm:$0xff]   ;;  %v4574_v12 = vld [vmem:[%s5042_s30 + $0xe0] ss:$16 sps:$4 sm:$0xff]  }
 0xc58   : > { %v4486_v59 = vunpack.i.h.bf16 %v4484_v9  ;;  %v4485_v14 = vunpack.i.l.bf16 %v4484_v9  ;;  %2926 = vmatprep.subr.bf16.mxu1 %v4558_v55  ;;  %v4576_v9 = vld [vmem:[%s5042_s30 + $0xe4] ss:$16 sps:$4 sm:$0xff]  }
 0xc59   : > { %v4605_v53 = vld [vmem:[%s5048_s4 + $0xf0] sm:$0xff]  }
 0xc5a   : > { %v2545_v20 = vsel %vm1860_vm3, %v2544_v43, %v4486_v59  ;;  %v1861_v15 = vsel %vm1860_vm3, %v1859_v6, %v4485_v14  ;;  %v4577_v59 = vld [vmem:[%s5042_s30 + $0xe8] ss:$16 sps:$4 sm:$0xff]   ;;  %v4607_v55 = vld [vmem:[%s5048_s4 + $0xb0] sm:$0xff]  }
 0xc5b   : > { %v4489_v17 = vpop.permute.xlu1 %4488  ;;  %2927 = vmatpush1.bf16.msra.mxu1 %v4556_v61  ;;  %v4609_v61 = vld [vmem:[%s5048_s4 + $0xf8] sm:$0xff]  }
 0xc5c   : > { %v4491_v18 = vunpack.i.h.bf16 %v4489_v17  ;;  %v4490_v19 = vunpack.i.l.bf16 %v4489_v17  ;;  %2928 = vmatprep.subr.bf16.mxu1 %v4564_v63  ;;  %v4611_v63 = vld [vmem:[%s5048_s4 + $0xb8] sm:$0xff]  }
 0xc5e   : > { %v2546_v21 = vsel %vm1862_vm4, %v2545_v20, %v4491_v18  ;;  %v1863_v22 = vsel %vm1862_vm4, %v1861_v15, %v4490_v19 }
 0xc5f   : > { %v2547_v23 = vpack.c.bf16 %v2546_v21, %v1863_v22  ;;  %2929 = vmatpush1.bf16.msra.mxu1 %v4562_v1  ;;  %v3996_v21 = vld [vmem:[%s5706_s21] ss:$0 sm:$0xff]  ;;  %v2752_v1 = vsub.s32 3, %v5166_v57 }
 0xc60   : > { %2930 = vmatprep.subr.bf16.mxu1 %v4570_v16 }
 0xc61   : > { %4322 = vmatmul.mubr.bf16.vlgmr.msra.gmra.mrb[12].mxu0 %v2547_v23 }
 0xc62   : > { %2993 = vmatprep.mubr.bf16.mxu0 %v4784_v29  ;;  %2962 = vmatpush1.bf16.msra.mxu0 %v4535_v10  ;;  %v4585_v10 = vld [vmem:[%s5048_s4 + $0xc8] sm:$0xff]  }
 0xc63   : > { %2963 = vmatprep.subr.bf16.mxu0 %v4543_v35  ;;  %2931 = vmatpush1.bf16.msra.mxu1 %v4568_v3  ;;  %v4588_v35 = vld [vmem:[%s5048_s4 + $0x50] sm:$0xff]  }
 0xc64   : > { %2932 = vmatprep.subr.bf16.mxu1 %v4576_v9 }
 0xc67   : > { %2933 = vmatpush1.bf16.msra.mxu1 %v4574_v12 }
 0xd34   : > { %v2653_v24 = vpop.f32.mrb[12].mxu0 }
 0xd35   : > { %v2654_v25 = vadd.f32 %v3987_v36, %v2653_v24  ;;  %v4323_v26 = vpop.f32.mrb[13].mxu0  ;;  %v3997_v24 = vld [vmem:[%s848_s7] ss:$0 sm:$0xff] }
 0xd36   : > { %v2656_v27 = vpop.f32.mrb[14].mxu0 }
 0xd37   : > { %v2657_v4 = vadd.f32 %v3987_v36, %v2656_v27  ;;  %v4324_v7 = vpop.f32.mrb[15].mxu0  ;;  %v2660_v28 = vadd.f32 %v2654_v25, %v5147_v50  ;;  %v4541_v50 = vld [vmem:[%s5042_s30 + $0x28] ss:$16 sps:$4 sm:$0xff]  }
 0xd38   : > { %2964 = vmatpush1.bf16.msra.mxu0 %v4541_v50  ;;  %v4580_v7 = vld [vmem:[%s5048_s4 + $0x40] sm:$0xff]   ;;  %v4590_v50 = vld [vmem:[%s5048_s4 + $0x10] sm:$0xff]  }
 0xd39   : > { %2664 = vadd.xlane.f32.xlu0 %v2660_v28  ;;  %v2661_v29 = vadd.f32 %v2657_v4, %v5149_v51  ;;  %2965 = vmatprep.subr.bf16.mxu0 %v4549_v46  ;;  %v4600_v46 = vld [vmem:[%s5048_s4 + $0x68] sm:$0xff]  }
 0xd3a   : > { %4132 = vmatprep.subr.bf16.mxu1 %v4580_v7 }
 0xd3b   : > { %2666 = vadd.xlane.f32.xlu1 %v2661_v29 }
 0xd3c   : > { %2966 = vmatpush1.bf16.msra.mxu0 %v4547_v48  ;;  %v4602_v48 = vld [vmem:[%s5048_s4 + $0x28] sm:$0xff]  }
 0xd3d   : > { %2967 = vmatprep.subr.bf16.mxu0 %v4555_v52  ;;  %v4604_v52 = vld [vmem:[%s5048_s4 + $0x70] sm:$0xff]  }
 0xd40   : > { %2968 = vmatpush1.bf16.msra.mxu0 %v4553_v54  ;;  %v4606_v54 = vld [vmem:[%s5048_s4 + $0x30] sm:$0xff]  }
 0xd41   : > { %2969 = vmatprep.subr.bf16.mxu0 %v4561_v56  ;;  %v4608_v56 = vld [vmem:[%s5048_s4 + $0x78] sm:$0xff]  }
 0xd44   : > { %2970 = vmatpush1.bf16.msra.mxu0 %v4559_v62  ;;  %v4610_v62 = vld [vmem:[%s5048_s4 + $0x38] sm:$0xff]  }
 0xd45   : > { %2971 = vmatprep.subr.bf16.mxu0 %v4567_v0  ;;  %v2736_v0 = vld [vmem:[%s5092_s0] sm:$0xf] }
 0xd46   : > { %v2749_v3 = vrot.slane %v2736_v0, %v959_v5  ;;  %v2745_v16 = vrot.slane %v2736_v0, %v5169_v58 }
 0xd48   : > { %2972 = vmatpush1.bf16.msra.mxu0 %v4565_v2  ;;  %v2741_v2 = vrot.slane %v2736_v0, %v5173_v60 }
 0xd49   : > { %2973 = vmatprep.subr.bf16.mxu0 %v4573_v30 }
 0xd4c   : > { %2974 = vmatpush1.bf16.msra.mxu0 %v4571_v8  ;;  %v2753_v8 = vrot.slane %v2736_v0, %v2752_v1 }
 0xd4d   : > { %2975 = vmatprep.subr.bf16.mxu0 %v4579_v11 }
 0xd50   : > { %2976 = vmatpush1.bf16.msra.mxu0 %v4577_v59 }
 0xdc6   : > { %v2665_v51 = vpop.xlane.xlu0 %2664 }
 0xdc7   : > { %v2669_v13 = vmul.f32 0.0078125, %v2665_v51  ;;  %v4591_v51 = vld [vmem:[%s5048_s4 + $0x90] sm:$0xff]  }
 0xdc8   : > { %v2667_v38 = vpop.xlane.xlu1 %2666 }
 0xdc9   : > { %v5389_v39 = vsub.f32 %v2660_v28, %v2669_v13  ;;  %v2670_v40 = vmul.f32 0.0078125, %v2667_v38  ;;  %v4581_v28 = vld [vmem:[%s5048_s4 + $0xc0] sm:$0xff]   ;;  %v4592_v13 = vld [vmem:[%s5048_s4 + $0x58] sm:$0xff]  }
 0xdca   : > { %4154 = vmatprep.subr.bf16.mxu0 %v4581_v28  ;;  %v4593_v38 = vld [vmem:[%s5048_s4 + $0xd8] sm:$0xff]  }
 0xdcb   : > { %v5391_v41 = vsub.f32 %v2661_v29, %v2670_v40  ;;  %v2673_v42 = vmul.f32 %v5389_v39, %v5389_v39  ;;  %v4582_v29 = vld [vmem:[%s5048_s4] sm:$0xff]   ;;  %v4595_v40 = vld [vmem:[%s5048_s4 + $0x98] sm:$0xff]  }
 0xdcd   : > { %2675 = vadd.xlane.f32.xlu0 %v2673_v42  ;;  %v2674_v44 = vmul.f32 %v5391_v41, %v5391_v41  ;;  %v4597_v42 = vld [vmem:[%s5048_s4 + $0xe0] sm:$0xff]  }
 0xdd1   : > { %2677 = vadd.xlane.f32.xlu0 %v2674_v44  ;;  %v4598_v44 = vld [vmem:[%s5048_s4 + $0x20] sm:$0xff]  }
 0xe5a   : > { %v2676_v14 = vpop.xlane.xlu0 %2675 }
 0xe5b   : > { %v2679_v17 = vmul.f32 0.0078125, %v2676_v14 }
 0xe5d   : > { %v2681_v43 = vadd.f32 1e-12, %v2679_v17 }
 0xe5e   : > { %v2678_v6 = vpop.xlane.xlu0 %2677 }
 0xe5f   : > { %4644 = vrsqrt.f32 %v2681_v43  ;;  %v2680_v18 = vmul.f32 0.0078125, %v2678_v6 }
 0xe61   : > { %v2682_v19 = vadd.f32 1e-12, %v2680_v18 }
 0xe63   : > { %4646 = vrsqrt.f32 %v2682_v19 }
 0xe69   : > { %v4645_v20 = vpop.eup %4644 }
 0xe6a   : > { %v2685_v15 = vmul.f32 %v4645_v20, %v5389_v39  ;;  %v4594_v39 = vld [vmem:[%s5048_s4 + $0x18] sm:$0xff]  }
 0xe6c   : > { %v2693_v36 = vmul.f32 %v3996_v21, %v2685_v15 }
 0xe6d   : > { %v4647_v22 = vpop.eup %4646 }
 0xe6e   : > { %v2686_v23 = vmul.f32 %v4647_v22, %v5391_v41  ;;  %v5433_v26 = vadd.f32 %v3997_v24, %v2693_v36  ;;  %v4596_v41 = vld [vmem:[%s5048_s4 + $0x60] sm:$0xff]   ;;  %s5711_s4 = sld [smem:[#allocation26_spill]] (!%p4065_p3) }
 0xe70   : > { %v2694_v25 = vmul.f32 %v3996_v21, %v2686_v23 }
 0xe72   : > { %v5435_v27 = vadd.f32 %v3997_v24, %v2694_v25 }
 0xe74   : > { %v2703_v4 = vpack.c.bf16 %v5435_v27, %v5433_v26 }
 0xe76   : > { %2951 = vmatmul.mubr.bf16.vlgmr.msra.gmra.mrb[28].mxu1 %v2703_v4  ;;  %2994 = vmatmul.mubr.bf16.vlgmr.msra.gmra.mrb[16].mxu0 %v2703_v4 }
 0xe77   : > { %4133 = vmatpush3.bf16.msra.mxu1 %v4582_v29  ;;  %4155 = vmatpush3.bf16.msra.mxu0 %v4583_v31 }
 0xe78   : > { %4134 = vmatprep.subr.bf16.mxu1 %v4584_v32  ;;  %4156 = vmatprep.subr.bf16.mxu0 %v4585_v10 }
 0xe7b   : > { %4135 = vmatpush3.bf16.msra.mxu1 %v4586_v33  ;;  %4157 = vmatpush3.bf16.msra.mxu0 %v4587_v34 }
 0xe7c   : > { %4136 = vmatprep.subr.bf16.mxu1 %v4588_v35  ;;  %4158 = vmatprep.subr.bf16.mxu0 %v4589_v37 }
 0xe7f   : > { %4137 = vmatpush3.bf16.msra.mxu1 %v4590_v50  ;;  %4159 = vmatpush3.bf16.msra.mxu0 %v4591_v51 }
 0xe80   : > { %4138 = vmatprep.subr.bf16.mxu1 %v4592_v13  ;;  %4160 = vmatprep.subr.bf16.mxu0 %v4593_v38 }
 0xe83   : > { %4139 = vmatpush3.bf16.msra.mxu1 %v4594_v39  ;;  %4161 = vmatpush3.bf16.msra.mxu0 %v4595_v40 }
 0xe84   : > { %4140 = vmatprep.subr.bf16.mxu1 %v4596_v41  ;;  %4162 = vmatprep.subr.bf16.mxu0 %v4597_v42 }
 0xe87   : > { %4141 = vmatpush3.bf16.msra.mxu1 %v4598_v44  ;;  %4163 = vmatpush3.bf16.msra.mxu0 %v4599_v45 }
 0xe88   : > { %4142 = vmatprep.subr.bf16.mxu1 %v4600_v46  ;;  %4164 = vmatprep.subr.bf16.mxu0 %v4601_v47 }
 0xe8b   : > { %4143 = vmatpush3.bf16.msra.mxu1 %v4602_v48  ;;  %4165 = vmatpush3.bf16.msra.mxu0 %v4603_v49 }
 0xe8c   : > { %4144 = vmatprep.subr.bf16.mxu1 %v4604_v52  ;;  %4166 = vmatprep.subr.bf16.mxu0 %v4605_v53 }
 0xe8f   : > { %4145 = vmatpush3.bf16.msra.mxu1 %v4606_v54  ;;  %4167 = vmatpush3.bf16.msra.mxu0 %v4607_v55 }
 0xe90   : > { %4146 = vmatprep.subr.bf16.mxu1 %v4608_v56  ;;  %4168 = vmatprep.subr.bf16.mxu0 %v4609_v61 }
 0xe93   : > { %4147 = vmatpush3.bf16.msra.mxu1 %v4610_v62  ;;  %4169 = vmatpush3.bf16.msra.mxu0 %v4611_v63 }
 0xf49   : > { %v2952_v30 = vpop.f32.mrb[28].mxu1  ;;  %v2995_v9 = vpop.f32.mrb[16].mxu0 }
 0xf4a   : > { %v5477_v11 = vadd.f32 %v2952_v30, %v2741_v2  ;;  %v5479_v12 = vadd.f32 %v2995_v9, %v2749_v3  ;;  %v2954_v59 = vpop.f32.mrb[29].mxu1  ;;  %v2997_v14 = vpop.f32.mrb[17].mxu0 }
 0xf4b   : > { %v5481_v17 = vadd.f32 %v2954_v59, %v2745_v16  ;;  %v5483_v43 = vadd.f32 %v2997_v14, %v2753_v8  ;;  %v2956_v6 = vpop.f32.mrb[30].mxu1  ;;  %v2999_v60 = vpop.f32.mrb[18].mxu0 }
 0xf4c   : > { %v3012_v57 = vmul.f32 0.044715, %v5477_v11  ;;  %v3014_v5 = vmul.f32 0.044715, %v5479_v12  ;;  %v2957_v58 = vadd.f32 %v2956_v6, %v2741_v2  ;;  %v3000_v18 = vadd.f32 %v2999_v60, %v2749_v3  ;;  %v2958_v19 = vpop.f32.mrb[31].mxu1  ;;  %v3001_v20 = vpop.f32.mrb[19].mxu0 }
 0xf4d   : > { %v3013_v15 = vmul.f32 0.044715, %v5481_v17  ;;  %v3015_v21 = vmul.f32 0.044715, %v5483_v43  ;;  %v5489_v22 = vadd.f32 %v2958_v19, %v2745_v16  ;;  %v5491_v23 = vadd.f32 %v3001_v20, %v2753_v8 }
 0xf4e   : > { %v3020_v36 = vmul.f32 %v3012_v57, %v5477_v11  ;;  %v3022_v24 = vmul.f32 %v3014_v5, %v5479_v12  ;;  %v3016_v25 = vmul.f32 0.044715, %v2957_v58  ;;  %v3018_v4 = vmul.f32 0.044715, %v3000_v18 }
 0xf4f   : > { %v3021_v7 = vmul.f32 %v3013_v15, %v5481_v17  ;;  %v3023_v28 = vmul.f32 %v3015_v21, %v5483_v43  ;;  %v3017_v29 = vmul.f32 0.044715, %v5489_v22  ;;  %v3019_v31 = vmul.f32 0.044715, %v5491_v23 }
 0xf50   : > { %v3028_v32 = vmul.f32 %v3020_v36, %v5477_v11  ;;  %v3030_v10 = vmul.f32 %v3022_v24, %v5479_v12  ;;  %v3024_v33 = vmul.f32 %v3016_v25, %v2957_v58  ;;  %v3026_v34 = vmul.f32 %v3018_v4, %v3000_v18 }
 0xf51   : > { %v3029_v35 = vmul.f32 %v3021_v7, %v5481_v17  ;;  %v3031_v37 = vmul.f32 %v3023_v28, %v5483_v43  ;;  %v3025_v50 = vmul.f32 %v3017_v29, %v5489_v22  ;;  %v3027_v51 = vmul.f32 %v3019_v31, %v5491_v23 }
 0xf52   : > { %v3036_v13 = vadd.f32 %v3028_v32, %v5477_v11  ;;  %v3038_v38 = vadd.f32 %v3030_v10, %v5479_v12  ;;  %v3032_v39 = vmul.f32 %v3024_v33, %v2957_v58  ;;  %v3034_v40 = vmul.f32 %v3026_v34, %v3000_v18 }
 0xf53   : > { %v3033_v41 = vmul.f32 %v3025_v50, %v5489_v22  ;;  %v3035_v42 = vmul.f32 %v3027_v51, %v5491_v23  ;;  %v3037_v48 = vadd.f32 %v3029_v35, %v5481_v17  ;;  %v3039_v54 = vadd.f32 %v3031_v37, %v5483_v43 }
 0xf54   : > { %v3044_v44 = vmul.f32 0.7978846, %v3036_v13  ;;  %v3046_v45 = vmul.f32 0.7978846, %v3038_v38  ;;  %v3040_v46 = vadd.f32 %v3032_v39, %v2957_v58  ;;  %v3042_v47 = vadd.f32 %v3034_v40, %v3000_v18 }
 0xf55   : > { %v3041_v49 = vadd.f32 %v3033_v41, %v5489_v22  ;;  %v3045_v55 = vmul.f32 0.7978846, %v3037_v48  ;;  %v3043_v61 = vadd.f32 %v3035_v42, %v5491_v23  ;;  %v3047_v62 = vmul.f32 0.7978846, %v3039_v54 }
 0xf56   : > { %4648 = vtanh.f32 %v3044_v44  ;;  %v3048_v52 = vmul.f32 0.7978846, %v3040_v46  ;;  %v3050_v53 = vmul.f32 0.7978846, %v3042_v47  ;;  %v3004_v30 = vmul.f32 0.5, %v5477_v11 }
 0xf57   : > { %4650 = vtanh.f32 %v3046_v45  ;;  %v3049_v56 = vmul.f32 0.7978846, %v3041_v49  ;;  %v3051_v63 = vmul.f32 0.7978846, %v3043_v61  ;;  %v3008_v9 = vmul.f32 0.5, %v2957_v58 }
 0xf58   : > { %4652 = vtanh.f32 %v3048_v52  ;;  %v3006_v6 = vmul.f32 0.5, %v5479_v12  ;;  %v3010_v60 = vmul.f32 0.5, %v3000_v18  ;;  %v3005_v19 = vmul.f32 0.5, %v5481_v17 }
 0xf59   : > { %4654 = vtanh.f32 %v3050_v53  ;;  %v3009_v24 = vmul.f32 0.5, %v5489_v22  ;;  %v3007_v58 = vmul.f32 0.5, %v5483_v43  ;;  %v3011_v28 = vmul.f32 0.5, %v5491_v23  ;;  %v4030_v43 = vld [vmem:[%s855_s13] ss:$0 sm:$0xff] }
 0xf5a   : > { %4656 = vtanh.f32 %v3045_v55 }
 0xf5b   : > { %4658 = vtanh.f32 %v3049_v56 }
 0xf5c   : > { %4660 = vtanh.f32 %v3047_v62 }
 0xf5d   : > { %4662 = vtanh.f32 %v3051_v63 }
 0xf60   : > { %v4649_v0 = vpop.eup %4648 }
 0xf61   : > { %v4651_v1 = vpop.eup %4650  ;;  %v3060_v2 = vadd.f32 1.0, %v4649_v0 }
 0xf62   : > { %v4653_v3 = vpop.eup %4652  ;;  %v3062_v16 = vadd.f32 1.0, %v4651_v1 }
 0xf63   : > { %v4655_v8 = vpop.eup %4654  ;;  %v3064_v59 = vadd.f32 1.0, %v4653_v3  ;;  %v3068_v15 = vmul.f32 %v3060_v2, %v3004_v30  ;;  %v4063_v30 = vld [vmem:[%s858_s24] ss:$0 sm:$0xff] }
 0xf64   : > { %v4657_v14 = vpop.eup %4656  ;;  %v3066_v57 = vadd.f32 1.0, %v4655_v8  ;;  %v3070_v4 = vmul.f32 %v3062_v16, %v3006_v6 }
 0xf65   : > { %v4659_v5 = vpop.eup %4658  ;;  %v3061_v20 = vadd.f32 1.0, %v4657_v14  ;;  %v3072_v21 = vmul.f32 %v3064_v59, %v3008_v9  ;;  %v4064_v14 = vld [vmem:[%s861_s5] ss:$0 sm:$0xff] }
 0xf66   : > { %v4661_v36 = vpop.eup %4660  ;;  %v3065_v25 = vadd.f32 1.0, %v4659_v5  ;;  %v3074_v7 = vmul.f32 %v3066_v57, %v3010_v60 }
 0xf67   : > { %v4663_v11 = vpop.eup %4662  ;;  %v3063_v12 = vadd.f32 1.0, %v4661_v36  ;;  %v3076_v18 = vpack.c.bf16 %v3072_v21, %v3068_v15  ;;  %v3069_v29 = vmul.f32 %v3061_v20, %v3005_v19  ;;  %v3473_v15 = vld [vmem:[%s5707_s25] sm:$0x3] (!%p4065_p3)  ;;  %v4790_v36 = vmov (!%p4065_p3), 0.0|0.0  }
 0xf68   : > { %v3073_v31 = vmul.f32 %v3065_v25, %v3009_v24  ;;  %v3067_v17 = vadd.f32 1.0, %v4663_v11  ;;  %v3078_v32 = vpack.c.bf16 %v3074_v7, %v3070_v4  ;;  %v4668_v21 = vld [vmem:[%s5708_s29] sm:$0xff] (!%p4065_p3)   ;;  %4387 = vmatprep.subr.bf16.mxu0 (!%p4065_p3), %v4790_v36  ;;  %v4792_v24 = vmov (!%p4065_p3), 0.0   ;;  %v4669_v25 = vld [vmem:[%s5708_s29 + $0x8] sm:$0xff] (!%p4065_p3)   ;;  %v4670_v4 = vld [vmem:[%s5708_s29 + $0x10] sm:$0xff] (!%p4065_p3)  }
 0xf69   : > { %v3071_v33 = vmul.f32 %v3063_v12, %v3007_v58  ;;  %4332 = vmatprep.subr.bf16.mxu1 (!%p4065_p3), %v4792_v24  ;;  %v4671_v7 = vld [vmem:[%s5708_s29 + $0x18] sm:$0xff] (!%p4065_p3)   ;;  %v4672_v11 = vld [vmem:[%s5708_s29 + $0x20] sm:$0xff] (!%p4065_p3)   ;;  %v4673_v58 = vld [vmem:[%s5708_s29 + $0x28] sm:$0xff] (!%p4065_p3)  }
 0xf6a   : > { %v3077_v10 = vpack.c.bf16 %v3073_v31, %v3069_v29  ;;  %v3075_v34 = vmul.f32 %v3067_v17, %v3011_v28  ;;  %v4674_v28 = vld [vmem:[%s5708_s29 + $0x30] sm:$0xff] (!%p4065_p3)   ;;  %v4675_v12 = vld [vmem:[%s5708_s29 + $0x38] sm:$0xff] (!%p4065_p3)   ;;  %v3662_v29 = vld [vmem:[%s5709_s22 + $0x8] sm:$0xff] (!%p4065_p3) }
 0xf6b   : > { %v3663_v31 = vld [vmem:[%s5709_s22 + $0x10] sm:$0xff] (!%p4065_p3) }
 0xf6c   : > { %3375 = vmatprep.mubr.bf16.mxu1 %v3077_v10  ;;  %v3079_v22 = vpack.c.bf16 %v3075_v34, %v3071_v33  ;;  %v3665_v33 = vld [vmem:[%s5709_s22 + $0x20] sm:$0xff] (!%p4065_p3)  ;;  %v3666_v34 = vld [vmem:[%s5709_s22 + $0x28] sm:$0xff] (!%p4065_p3) }
 0xf6d   : > { %3376 = vmatmul.mubr.bf16.vlgmr.msra.gmra.mrb[32].mxu1 %v3076_v18  ;;  %v3661_v18 = vld [vmem:[%s5709_s22] sm:$0xff] (!%p4065_p3) }
 0xf6e   : > { %3416 = vmatprep.mubr.bf16.mxu0 %v3079_v22  ;;  %4333 = vmatpush3.bf16.msra.mxu1 (!%p4065_p3), %v4668_v21  ;;  %v4391_v17 = vpack.c.bf16 (!%p4065_p3), %v3662_v29, %v3661_v18  ;;  %v4397_v22 = vpack.c.bf16 (!%p4065_p3), %v3666_v34, %v3665_v33 }
 0xf6f   : > { %3417 = vmatmul.mubr.bf16.vlgmr.msra.gmra.mrb[20].mxu0 %v3078_v32  ;;  %4348 = vmatprep.mubr.msk.bf16.mxu1 (!%p4065_p3), %vm4791_vm5, %v4792_v24  ;;  %v3664_v32 = vld [vmem:[%s5709_s22 + $0x18] sm:$0xff] (!%p4065_p3) }
 0xf70   : > { %4329 = vmatprep.mubr.msk.f32.mxu0 (!%p4065_p3), %vm4791_vm5, %v4792_v24  ;;  %4334 = vmatprep.subr.bf16.mxu1 (!%p4065_p3), %v4792_v24  ;;  %v4394_v10 = vpack.c.bf16 (!%p4065_p3), %v3664_v32, %v3663_v31 }
 0xf72   : > { %4335 = vmatpush3.bf16.msra.mxu1 (!%p4065_p3), %v4669_v25 }
 0xf73   : > { %4336 = vmatprep.subr.bf16.mxu1 (!%p4065_p3), %v4792_v24 }
 0xf76   : > { %4337 = vmatpush3.bf16.msra.mxu1 (!%p4065_p3), %v4670_v4 }
 0xf77   : > { %4338 = vmatprep.subr.bf16.mxu1 (!%p4065_p3), %v4792_v24 }
 0xf7a   : > { %4339 = vmatpush3.bf16.msra.mxu1 (!%p4065_p3), %v4671_v7 }
 0xf7b   : > { %4340 = vmatprep.subr.bf16.mxu1 (!%p4065_p3), %v4792_v24 }
 0xf7e   : > { %4341 = vmatpush3.bf16.msra.mxu1 (!%p4065_p3), %v4672_v11 }
 0xf7f   : > { %4342 = vmatprep.subr.bf16.mxu1 (!%p4065_p3), %v4792_v24 }
 0xf82   : > { %4343 = vmatpush3.bf16.msra.mxu1 (!%p4065_p3), %v4673_v58 }
 0xf83   : > { %4344 = vmatprep.subr.bf16.mxu1 (!%p4065_p3), %v4792_v24 }
 0xf86   : > { %4345 = vmatpush3.bf16.msra.mxu1 (!%p4065_p3), %v4674_v28 }
 0xf87   : > { %4346 = vmatprep.subr.bf16.mxu1 (!%p4065_p3), %v4792_v24 }
 0xf8a   : > { %4347 = vmatpush3.bf16.msra.mxu1 (!%p4065_p3), %v4675_v12 }
0x1040   : > { %v4148_v35 = vpop.f32.mrb[32].mxu1 }
0x1041   : > { %v4149_v23 = vpop.f32.mrb[33].mxu1 }
0x1042   : > { %v4170_v37 = vpop.f32.mrb[20].mxu0  ;;  %v4150_v50 = vadd.f32 %v4149_v23, %v4148_v35  ;;  %v4151_v51 = vpop.f32.mrb[34].mxu1  ;;  %v3667_v35 = vld [vmem:[%s5709_s22 + $0x30] sm:$0xff] (!%p4065_p3) }
0x1043   : > { %v4171_v13 = vpop.f32.mrb[21].mxu0  ;;  %v4152_v38 = vpop.f32.mrb[35].mxu1 }
0x1044   : > { %v3378_v39 = vadd.f32 %v4150_v50, %v4030_v43  ;;  %v4172_v40 = vadd.f32 %v4171_v13, %v4170_v37  ;;  %v4173_v41 = vpop.f32.mrb[22].mxu0  ;;  %v4153_v42 = vadd.f32 %v4152_v38, %v4151_v51  ;;  %v3669_v37 = vld [vmem:[%s5709_s22 + $0x40] sm:$0xff] (!%p4065_p3)  ;;  %v3670_v50 = vld [vmem:[%s5709_s22 + $0x48] sm:$0xff] (!%p4065_p3) }
0x1045   : > { %v4174_v44 = vpop.f32.mrb[23].mxu0  ;;  %v4403_v51 = vpack.c.bf16 (!%p4065_p3), %v3670_v50, %v3669_v37 }
0x1046   : > { %v3419_v45 = vadd.f32 %v4172_v40, %v3378_v39  ;;  %v3381_v46 = vadd.f32 %v4153_v42, %v4030_v43  ;;  %v4175_v47 = vadd.f32 %v4174_v44, %v4173_v41  ;;  %v3668_v43 = vld [vmem:[%s5709_s22 + $0x38] sm:$0xff] (!%p4065_p3)  ;;  %v3671_v40 = vld [vmem:[%s5709_s22 + $0x50] sm:$0xff] (!%p4065_p3)  ;;  %v3673_v44 = vld [vmem:[%s5709_s22 + $0x60] sm:$0xff] (!%p4065_p3) }
0x1047   : > { %v4400_v23 = vpack.c.bf16 (!%p4065_p3), %v3668_v43, %v3667_v35  ;;  %v3672_v41 = vld [vmem:[%s5709_s22 + $0x58] sm:$0xff] (!%p4065_p3) }
0x1048   : > { %v3422_v48 = vadd.f32 %v4175_v47, %v3381_v46  ;;  %v3425_v49 = vadd.f32 %v3419_v45, %v5433_v26  ;;  %v4406_v42 = vpack.c.bf16 (!%p4065_p3), %v3672_v41, %v3671_v40  ;;  %v3674_v45 = vld [vmem:[%s5709_s22 + $0x68] sm:$0xff] (!%p4065_p3)  ;;  %v3675_v47 = vld [vmem:[%s5709_s22 + $0x70] sm:$0xff] (!%p4065_p3) }
0x1049   : > { %v4409_v46 = vpack.c.bf16 (!%p4065_p3), %v3674_v45, %v3673_v44 }
0x104a   : > { %3429 = vadd.xlane.f32.xlu1 %v3425_v49  ;;  %v3426_v52 = vadd.f32 %v3422_v48, %v5435_v27  ;;  %v3676_v48 = vld [vmem:[%s5709_s22 + $0x78] sm:$0xff] (!%p4065_p3) }
0x104c   : > { %3431 = vadd.xlane.f32.xlu0 %v3426_v52 }
0x10d7   : > { %v3430_v53 = vpop.xlane.xlu1 %3429 }
0x10d8   : > { %v3433_v54 = vmul.f32 0.0078125, %v3430_v53 }
0x10d9   : > { %v3432_v55 = vpop.xlane.xlu0 %3431 }
0x10da   : > { %v3435_v56 = vsub.f32 %v3425_v49, %v3433_v54  ;;  %v3434_v61 = vmul.f32 0.0078125, %v3432_v55  ;;  %v4412_v49 = vpack.c.bf16 (!%p4065_p3), %v3676_v48, %v3675_v47 }
0x10dc   : > { %v3436_v62 = vsub.f32 %v3426_v52, %v3434_v61  ;;  %v3437_v63 = vmul.f32 %v3435_v56, %v3435_v56  ;;  %v4067_v52 = vld [vmem:[%s5710_s17] ss:$0 sm:$0xff] (!%p4065_p3) }
0x10de   : > { %3439 = vadd.xlane.f32.xlu1 %v3437_v63  ;;  %v3438_v0 = vmul.f32 %v3436_v62, %v3436_v62  ;;  %v4076_v63 = vld [vmem:[#allocation3] ss:$0 sm:$0xff] (!%p4065_p3) }
0x10e0   : > { %3441 = vadd.xlane.f32.xlu0 %v3438_v0 }
0x116b   : > { %v3440_v1 = vpop.xlane.xlu1 %3439 }
0x116c   : > { %v3443_v2 = vmul.f32 0.0078125, %v3440_v1 }
0x116d   : > { %v3442_v3 = vpop.xlane.xlu0 %3441 }
0x116e   : > { %v3445_v26 = vadd.f32 1e-12, %v3443_v2  ;;  %v3444_v16 = vmul.f32 0.0078125, %v3442_v3 }
0x1170   : > { %4664 = vrsqrt.f32 %v3445_v26  ;;  %v3446_v27 = vadd.f32 1e-12, %v3444_v16 }
0x1172   : > { %4666 = vrsqrt.f32 %v3446_v27 }
0x117a   : > { %v4665_v8 = vpop.eup %4664 }
0x117b   : > { %v3449_v9 = vmul.f32 %v4665_v8, %v3435_v56 }
0x117c   : > { %v4667_v59 = vpop.eup %4666 }
0x117d   : > { %v3457_v6 = vmul.f32 %v4063_v30, %v3449_v9  ;;  %v3450_v60 = vmul.f32 %v4667_v59, %v3436_v62  ;;  %3472 = sbr.rel (%p4065_p3) target bundleno = 5142 (0x1416), region = 120 }
0x117f   : > { %v3465_v57 = vadd.f32 %v4064_v14, %v3457_v6  ;;  %v3458_v5 = vmul.f32 %v4063_v30, %v3450_v60 }
0x1181   : > { %3467 = vst [vmem:[#allocation2] sm:$0xff] %v3465_v57  ;;  %v3466_v19 = vadd.f32 %v4064_v14, %v3458_v5 }
0x1183   : > { %3468 = vst [vmem:[#allocation2 + $0x8] sm:$0xff] %v3466_v19  ;;  %v4388_v20 = vpack.c.bf16 (!%p4065_p3), %v3466_v19, %v3465_v57 }
0x1185   : > { %4389 = vmatpush3.bf16.msra.mxu0 %v4388_v20 }
0x1186   : > { %4390 = vmatprep.subr.bf16.mxu0 %v4790_v36 }
0x1188   : > { %4330 = vmatmul.mubr.msk.f32.vlgmr.msra.gmra.mrb[0].mxu0 %vm3474_vm6, %v3473_v15 }
0x1189   : > { %4384 = vmatprep.mubr.msk.f32.mxu0 %vm4791_vm5, %v4792_v24  ;;  %4392 = vmatpush3.bf16.msra.mxu0 %v4391_v17 }
0x118a   : > { %4393 = vmatprep.subr.bf16.mxu0 %v4790_v36 }
0x118d   : > { %4395 = vmatpush3.bf16.msra.mxu0 %v4394_v10 }
0x118e   : > { %4396 = vmatprep.subr.bf16.mxu0 %v4790_v36 }
0x1191   : > { %4398 = vmatpush3.bf16.msra.mxu0 %v4397_v22 }
0x1192   : > { %4399 = vmatprep.subr.bf16.mxu0 %v4790_v36 }
0x1195   : > { %4401 = vmatpush3.bf16.msra.mxu0 %v4400_v23 }
0x1196   : > { %4402 = vmatprep.subr.bf16.mxu0 %v4790_v36 }
0x1199   : > { %4404 = vmatpush3.bf16.msra.mxu0 %v4403_v51 }
0x119a   : > { %4405 = vmatprep.subr.bf16.mxu0 %v4790_v36 }
0x119d   : > { %4407 = vmatpush3.bf16.msra.mxu0 %v4406_v42 }
0x119e   : > { %4408 = vmatprep.subr.bf16.mxu0 %v4790_v36 }
0x11a1   : > { %4410 = vmatpush3.bf16.msra.mxu0 %v4409_v46 }
0x11a2   : > { %4411 = vmatprep.subr.bf16.mxu0 %v4790_v36 }
0x11a5   : > { %4413 = vmatpush3.bf16.msra.mxu0 %v4412_v49 }
0x125b   : > { %v3544_v13 = vpop.f32.mrb[0].mxu0 }
0x125c   : > { %v3548_v38 = vpack.c.bf16 %v3544_v13, %v3544_v13  ;;  %v4331_v39 = vpop.f32.mrb[1].mxu0 }
0x125e   : > { %4349 = vmatmul.mubr.bf16.vlgmr.msra.gmra.mrb[0].mxu1 %v3548_v38 }
0x1331   : > { %v3654_v53 = vpop.f32.mrb[0].mxu1 }
0x1332   : > { %v3655_v54 = vadd.f32 %v4067_v52, %v3654_v53  ;;  %v4350_v55 = vpop.f32.mrb[1].mxu1 }
0x1333   : > { %v3657_v56 = vpop.f32.mrb[2].mxu1 }
0x1334   : > { %4676 = vtanh.f32 %v3655_v54  ;;  %v4351_v61 = vpop.f32.mrb[3].mxu1 }
0x133e   : > { %v4677_v62 = vpop.eup %4676 }
0x133f   : > { %4385 = vmatmul.mubr.f32.vlgmr.msra.gmra.mrb[2].mxu0 %v4677_v62 }
0x1412   : > { %v3750_v0 = vpop.f32.mrb[2].mxu0 }
0x1413   : > { %v3751_v1 = vadd.f32 %v4076_v63, %v3750_v0  ;;  %v4386_v2 = vpop.f32.mrb[3].mxu0 }
0x1415   : > { %3755 = vst.msk [vmem:[%s5711_s4] sm:$0x3] %vm3754_vm7, %v3751_v1 }
0x1416 PF: > { %s5712_s28 = sld [smem:[#allocation12_spill]]  ;;  %s5713_s26 = sld [smem:[#allocation10_spill]] }
0x1417   : > { %s5714_s27 = sld [smem:[#allocation11_spill]]  ;;  %s5715_s3 = sld [smem:[#allocation13_spill]] }
0x141c   : > { %p36_p6 = scmp.ge.s32.totalorder %s5712_s28, 4  }
0x141e   :  { %38 = sbr.rel (!%p36_p6) target bundleno = 19 (0x13), region = 191 }
0x1425   :  { %3767 = vsyncpa [#allocation5], 1 }
0x1426   :  { %3769 = vsyncpa [#allocation5 + $0x1], 1 }
0x1427   :  { %3770 = vsyncpa [#allocation7], 1 }
0x1428   :  { %3772 = vsyncpa [#allocation7 + $0x1], 1 }

</bundles_post_ra>
